<compile_context>
chip_gen: v6e
topology: v6e:2x2x1
jax: 0.10.0
libtpu: 0.0.40
codegen_flags: <defaults>
</compile_context>

<pallas_src>
import jax
import jax.numpy as jnp
from jax.experimental import pallas as pl
from jax.experimental.pallas import tpu as pltpu

EPS = 0.0001       # channel-inflation epsilon from Part_STGCN
BN_EPS = 1e-5


# ----------------------------------------------------------------------------
# Pallas kernel: one fused STGCN block, one (N*M) sample per grid step.
# ----------------------------------------------------------------------------
def _make_block_kernel(T_in, T_out, VCin, VCout, res_mode):
    def kernel(x_ref, ins_ref, inb_ref, wg_ref, bg_ref, wt_ref, bt_ref, tap_ref, *rest):
        if res_mode == "conv":
            wr_ref, br_ref, o_ref = rest
        else:
            (o_ref,) = rest

        # data_bn (per-(v,c) scale/shift; identity rows for every block but the first)
        xf = x_ref[0].astype(jnp.float32) * ins_ref[...] + inb_ref[...]        # (T_in, VCin)

        # ---- unit_gcn: fused 1x1-conv + adjacency + BN (folded) + ReLU -------------
        h = jnp.dot(xf, wg_ref[...], preferred_element_type=jnp.float32) + bg_ref[...]
        h = jnp.maximum(h, 0.0)                                                 # (T_in, VCout)

        # ---- unit_tcn: 9-tap temporal conv (+ folded BN).  Each tap is a block-diag
        #      channel matmul followed by a tiny 0/1 tap matmul that does the temporal
        #      shift, zero padding and stride in one go.
        hw = jnp.dot(h, wt_ref[0], preferred_element_type=jnp.float32)
        acc = jnp.dot(tap_ref[0], hw, preferred_element_type=jnp.float32) + bt_ref[...]
        for dt in range(1, 9):                       # static unroll -> 2 MXU matmuls / tap
            hw = jnp.dot(h, wt_ref[dt], preferred_element_type=jnp.float32)     # (T_in, VCout)
            acc = acc + jnp.dot(tap_ref[dt], hw, preferred_element_type=jnp.float32)

        # ---- residual + final ReLU --------------------------------------------------
        if res_mode == "identity":                   # stride 1, Cin == Cout
            acc = acc + xf
        elif res_mode == "conv":                     # unit_tcn(kernel=1, stride) + BN
            r = jnp.dot(xf, wr_ref[...], preferred_element_type=jnp.float32) + br_ref[...]
            acc = acc + jnp.dot(tap_ref[4], r, preferred_element_type=jnp.float32)
        o_ref[0] = jnp.maximum(acc, 0.0).astype(o_ref.dtype)

    return kernel


def _resident_spec(arr):
    nd = arr.ndim
    return pl.BlockSpec(arr.shape, lambda n, _nd=nd: (0,) * _nd)


def _stgcn_block(x, bp):
    """One STGCN block: (NM, T_in, V*Cin) -> (NM, T_out, V*Cout)."""
    NM, T_in, VCin = x.shape
    VCout = bp["wg"].shape[1]
    T_out = bp["tap"].shape[1]
    res_mode = bp["res_mode"]

    kernel = _make_block_kernel(T_in, T_out, VCin, VCout, res_mode)
    operands = [x, bp["in_s"], bp["in_b"], bp["wg"], bp["bg"], bp["wt"], bp["bt"], bp["tap"]]
    in_specs = [pl.BlockSpec((1, T_in, VCin), lambda n: (n, 0, 0))]
    in_specs += [_resident_spec(a) for a in operands[1:]]
    if res_mode == "conv":
        operands += [bp["wr"], bp["br"]]
        in_specs += [_resident_spec(bp["wr"]), _resident_spec(bp["br"])]

    return pl.pallas_call(
        kernel,
        out_shape=jax.ShapeDtypeStruct((NM, T_out, VCout), x.dtype),
        grid_spec=pltpu.PrefetchScalarGridSpec(
            num_scalar_prefetch=0,
            grid=(NM,),
            in_specs=in_specs,
            out_specs=pl.BlockSpec((1, T_out, VCout), lambda n: (n, 0, 0)),
        ),
        compiler_params=pltpu.CompilerParams(
            dimension_semantics=("parallel",),      # shard samples across TensorCores
            vmem_limit_bytes=32 * 1024 * 1024,
        ),
    )(*operands)


def part_stgcn_forward(x, folded, V):
    """x: (N, M, T, V, C) -> (out, out) with out: (N, M, C_out, T_out, V), matching
    Part_STGCN.forward (inference-mode BatchNorm)."""
    N, M, T, Vx, C = x.shape
    assert Vx == V
    h = x.reshape(N * M, T, V * C)               # lane-flat row-major collapse (free)
    for bp in folded:
        h = _stgcn_block(h, bp)
    NM, T_o, VCo = h.shape
    Co = VCo // V
    out = h.reshape(N, M, T_o, V, Co).transpose(0, 1, 4, 2, 3)   # (N, M, Co, T_o, V)
    return out, out


# ----------------------------------------------------------------------------
# Stage plan (replicates Part_STGCN.__init__ channel / stride schedule)
# ----------------------------------------------------------------------------
def stage_plan(in_channels, base_channels, ch_ratio, num_stages, inflate_stages,
               down_stages, T):
    plan = []
    t = T
    if in_channels != base_channels:
        plan.append(dict(cin=in_channels, cout=base_channels, stride=1,
                         t_in=t, t_out=t, res_mode="none"))
    bc = base_channels
    inflate = 0
    for i in range(2, num_stages + 1):
        stride = 1 + (i in down_stages)
        cin = bc
        if i in inflate_stages:
            inflate += 1
        cout = int(base_channels * ch_ratio ** inflate + EPS)
        bc = cout
        t_out = (t - 1) // stride + 1
        res = "identity" if (cin == cout and stride == 1) else "conv"
        plan.append(dict(cin=cin, cout=cout, stride=stride, t_in=t, t_out=t_out,
                         res_mode=res))
        t = t_out
    return plan


# ----------------------------------------------------------------------------
# Parameters (PyTorch-equivalent raw params) + host-side folding for the kernel
# ----------------------------------------------------------------------------
def _rand_bn(key, c):
    k1, k2, k3, k4 = jax.random.split(key, 4)
    return dict(gamma=1.0 + 0.1 * jax.random.normal(k1, (c,), jnp.float32),
                beta=0.1 * jax.random.normal(k2, (c,), jnp.float32),
                mean=0.1 * jax.random.normal(k3, (c,), jnp.float32),
                var=1.0 + jnp.abs(0.1 * jax.random.normal(k4, (c,), jnp.float32)))


def _bn_scale_shift(bn):
    s = bn["gamma"] / jnp.sqrt(bn["var"] + BN_EPS)
    return s, bn["beta"] - bn["mean"] * s


def make_part_adjacency_list(V):
    """Synthetic part sub-graphs; each entry has K=3 subsets (self / inward / outward)."""
    def subsets(edges):
        def col_norm(a):
            d = a.sum(axis=0, keepdims=True)
            return a / jnp.where(d > 0, d, 1.0)
        return jnp.stack([jnp.eye(V, dtype=jnp.float32), col_norm(edges), col_norm(edges.T)])
    idx = jnp.arange(V - 1)
    chain = jnp.zeros((V, V), jnp.float32).at[idx, idx + 1].set(1.0)
    star = jnp.zeros((V, V), jnp.float32).at[0, jnp.arange(1, V)].set(1.0)
    return [subsets(chain), subsets(star)]


def make_raw_params(key, plan, V, cin0, A):
    K = A.shape[0]
    keys = jax.random.split(key, len(plan) + 1)
    raw = dict(data_bn=_rand_bn(keys[0], V * cin0), blocks=[])
    for bk, st in zip(keys[1:], plan):
        ci, co = st["cin"], st["cout"]
        ks = jax.random.split(bk, 10)
        blk = dict(
            A=A,
            gcn_w=jax.random.normal(ks[0], (K, co, ci), jnp.float32) / jnp.sqrt(K * ci),
            gcn_b=0.1 * jax.random.normal(ks[1], (K, co), jnp.float32),
            gcn_bn=_rand_bn(ks[2], co),
            tcn_w=jax.random.normal(ks[3], (9, co, co), jnp.float32) / jnp.sqrt(9.0 * co),
            tcn_b=0.1 * jax.random.normal(ks[4], (co,), jnp.float32),
            tcn_bn=_rand_bn(ks[5], co),
        )
        if st["res_mode"] == "conv":
            blk["res_w"] = jax.random.normal(ks[6], (ci, co), jnp.float32) / jnp.sqrt(ci)
            blk["res_b"] = 0.1 * jax.random.normal(ks[7], (co,), jnp.float32)
            blk["res_bn"] = _rand_bn(ks[8], co)
        raw["blocks"].append(blk)
    return raw


def fold_params(raw, plan, V):
    """Fold conv biases, adjacency and inference-mode BatchNorms into matmul operands."""
    folded = []
    s_d, b_d = _bn_scale_shift(raw["data_bn"])                     # (V*Cin0,)
    eyeV = jnp.eye(V, dtype=jnp.float32)
    for bi, (st, blk) in enumerate(zip(plan, raw["blocks"])):
        ci, co = st["cin"], st["cout"]
        t_in, t_out, stride = st["t_in"], st["t_out"], st["stride"]
        A = blk["A"]

        # unit_gcn -> one fused (V*ci, V*co) matmul (conv x adjacency, BN folded)
        sg, tg = _bn_scale_shift(blk["gcn_bn"])
        wg = jnp.einsum("kvw,koi->viwo", A, blk["gcn_w"]).reshape(V * ci, V * co)
        bg = jnp.einsum("ko,kw->wo", blk["gcn_b"], A.sum(axis=1)).reshape(V * co)
        sg_t, tg_t = jnp.tile(sg, V), jnp.tile(tg, V)
        wg = wg * sg_t[None, :]
        bg = bg * sg_t + tg_t

        # unit_tcn -> 9 block-diagonal (over joints) tap weights, BN folded
        stn, ttn = _bn_scale_shift(blk["tcn_bn"])
        wt = blk["tcn_w"] * stn[None, None, :]                              # (9, co, co)
        wtb = jnp.einsum("vw,dio->dviwo", eyeV, wt).reshape(9, V * co, V * co)
        btb = jnp.tile(blk["tcn_b"] * stn + ttn, V)

        # tap matrices: temporal shift + zero padding + stride as 0/1 matmuls
        t_o = jnp.arange(t_out)[:, None]
        t_i = jnp.arange(t_in)[None, :]
        tap = jnp.stack([(t_i == t_o * stride + dt - 4).astype(jnp.float32)
                         for dt in range(9)])                               # (9, t_out, t_in)

        # data_bn rows (only the first block normalises its input)
        if bi == 0:
            in_s, in_b = s_d.reshape(1, -1), b_d.reshape(1, -1)
        else:
            in_s = jnp.ones((1, V * ci), jnp.float32)
            in_b = jnp.zeros((1, V * ci), jnp.float32)

        fp = dict(res_mode=st["res_mode"], in_s=in_s, in_b=in_b,
                  wg=wg, bg=bg.reshape(1, -1), wt=wtb, bt=btb.reshape(1, -1), tap=tap)

        if st["res_mode"] == "conv":                 # residual unit_tcn(k=1, stride) + BN
            sr, tr = _bn_scale_shift(blk["res_bn"])
            wr = jnp.einsum("vw,io->viwo", eyeV,
                            blk["res_w"] * sr[None, :]).reshape(V * ci, V * co)
            br = jnp.tile(blk["res_b"] * sr + tr, V)
            fp["wr"], fp["br"] = wr, br.reshape(1, -1)
        folded.append(fp)
    return folded


# ----------------------------------------------------------------------------
# Pure-JAX reference with the raw (unfolded) parameters, original module semantics.
# ----------------------------------------------------------------------------
def part_stgcn_ref(x, raw, plan, V):
    HI = jax.lax.Precision.HIGHEST
    N, M, T, _, C = x.shape
    h = x.reshape(N * M, T, V, C)
    s_d, b_d = _bn_scale_shift(raw["data_bn"])
    h = h * s_d.reshape(V, C) + b_d.reshape(V, C)                   # data_bn ('VC')
    for st, blk in zip(plan, raw["blocks"]):
        A, stride = blk["A"], st["stride"]
        # unit_gcn ('pre' conv + einsum over A + BN + ReLU)
        y = jnp.einsum("ntvi,koi->ntvko", h, blk["gcn_w"], precision=HI) + blk["gcn_b"]
        z = jnp.einsum("ntvko,kvw->ntwo", y, A, precision=HI)
        sg, tg = _bn_scale_shift(blk["gcn_bn"])
        z = jnp.maximum(z * sg + tg, 0.0)
        # unit_tcn (9x1, pad 4, stride) + BN
        zp = jnp.pad(z, ((0, 0), (4, 4), (0, 0), (0, 0)))
        t_in = h.shape[1]
        full = sum(jnp.einsum("ntvi,io->ntvo", zp[:, dt:dt + t_in], blk["tcn_w"][dt],
                              precision=HI) for dt in range(9)) + blk["tcn_b"]
        stn, ttn = _bn_scale_shift(blk["tcn_bn"])
        out = (full * stn + ttn)[:, ::stride]
        # residual
        if st["res_mode"] == "identity":
            res = h
        elif st["res_mode"] == "conv":
            r = jnp.einsum("ntvi,io->ntvo", h, blk["res_w"], precision=HI) + blk["res_b"]
            sr, tr = _bn_scale_shift(blk["res_bn"])
            res = (r * sr + tr)[:, ::stride]
        else:
            res = 0.0
        h = jnp.maximum(out + res, 0.0)
    NM, T_o, _, Co = h.shape
    out = h.reshape(N, M, T_o, V, Co).transpose(0, 1, 4, 2, 3)
    return out, out


# ----------------------------------------------------------------------------
if __name__ == "__main__":
    # Small-but-faithful config: V=8 joints (part sub-graph), K=3 adjacency subsets,
    # N=2 clips, M=1 person, T=16 frames, in_channels=3, base_channels=16,
    # 4 stages with one channel inflation and one temporal down-sampling (stage 3).
    N, M, T, V, Cin = 2, 1, 16, 8, 3
    base_channels, ch_ratio, num_stages = 16, 2, 4
    inflate_stages, down_stages = [3], [3]
    part = 0

    plan = stage_plan(Cin, base_channels, ch_ratio, num_stages,
                      inflate_stages, down_stages, T)
    A_list = make_part_adjacency_list(V)
    A = A_list[part]

    key = jax.random.PRNGKey(0)
    kx, kp = jax.random.split(key)
    x = jax.random.normal(kx, (N, M, T, V, Cin), jnp.float32)

    raw = make_raw_params(kp, plan, V, Cin, A)
    folded = fold_params(raw, plan, V)

    out, _ = part_stgcn_forward(x, folded, V)
    jax.block_until_ready(out)

    ref, _ = part_stgcn_ref(x, raw, plan, V)
    err = float(jnp.max(jnp.abs(out - ref)))
    scale = float(jnp.max(jnp.abs(ref))) + 1e-6

    assert out.shape == (N, M, 32, 8, V), out.shape
    assert bool(jnp.all(jnp.isfinite(out)))
    # tolerance accounts for MXU bf16-pass rounding at DEFAULT matmul precision
    assert err <= 2e-2 * scale + 1e-4, f"max abs err {err} (ref scale {scale})"
    print("KERNEL_OK")
</pallas_src>

<mosaic_0001>
module attributes {stable_mosaic.version = 11 : i64} {
  func.func @kernel(%arg0: i32, %arg1: memref<1x16x24xf32, #tpu.memory_space<vmem>>, %arg2: memref<1x24xf32, #tpu.memory_space<vmem>>, %arg3: memref<1x24xf32, #tpu.memory_space<vmem>>, %arg4: memref<24x128xf32, #tpu.memory_space<vmem>>, %arg5: memref<1x128xf32, #tpu.memory_space<vmem>>, %arg6: memref<9x128x128xf32, #tpu.memory_space<vmem>>, %arg7: memref<1x128xf32, #tpu.memory_space<vmem>>, %arg8: memref<9x16x16xf32, #tpu.memory_space<vmem>>, %arg9: memref<1x16x128xf32, #tpu.memory_space<vmem>>) attributes {dimension_semantics = [#tpu.dimension_semantics<parallel>], iteration_bounds = array<i64: 2>, scalar_prefetch = 0 : i64, scratch_operands = 0 : i64, tpu.core_type = #tpu.core_type<tc>, window_params = [{transform_indices = @transform_0, window_bounds = array<i64: 1, 16, 24>}, {pipeline_mode = #tpu.pipeline_mode<synchronous>, transform_indices = @transform_1, window_bounds = array<i64: 1, 24>}, {pipeline_mode = #tpu.pipeline_mode<synchronous>, transform_indices = @transform_2, window_bounds = array<i64: 1, 24>}, {pipeline_mode = #tpu.pipeline_mode<synchronous>, transform_indices = @transform_3, window_bounds = array<i64: 24, 128>}, {pipeline_mode = #tpu.pipeline_mode<synchronous>, transform_indices = @transform_4, window_bounds = array<i64: 1, 128>}, {pipeline_mode = #tpu.pipeline_mode<synchronous>, transform_indices = @transform_5, window_bounds = array<i64: 9, 128, 128>}, {pipeline_mode = #tpu.pipeline_mode<synchronous>, transform_indices = @transform_6, window_bounds = array<i64: 1, 128>}, {pipeline_mode = #tpu.pipeline_mode<synchronous>, transform_indices = @transform_7, window_bounds = array<i64: 9, 16, 16>}, {transform_indices = @transform_8, window_bounds = array<i64: 1, 16, 128>}]} {
    %c0 = arith.constant 0 : index
    %c0_0 = arith.constant 0 : index
    %c0_1 = arith.constant 0 : index
    %0 = vector.load %arg1[%c0, %c0_0, %c0_1] : memref<1x16x24xf32, #tpu.memory_space<vmem>>, vector<1x16x24xf32>
    %1 = vector.shape_cast %0 : vector<1x16x24xf32> to vector<16x24xf32>
    %c0_2 = arith.constant 0 : index
    %c0_3 = arith.constant 0 : index
    %2 = vector.load %arg2[%c0_2, %c0_3] : memref<1x24xf32, #tpu.memory_space<vmem>>, vector<1x24xf32>
    %3 = vector.broadcast %2 : vector<1x24xf32> to vector<16x24xf32>
    %4 = arith.mulf %1, %3 : vector<16x24xf32>
    %c0_4 = arith.constant 0 : index
    %c0_5 = arith.constant 0 : index
    %5 = vector.load %arg3[%c0_4, %c0_5] : memref<1x24xf32, #tpu.memory_space<vmem>>, vector<1x24xf32>
    %6 = vector.broadcast %5 : vector<1x24xf32> to vector<16x24xf32>
    %7 = arith.addf %4, %6 : vector<16x24xf32>
    %c0_6 = arith.constant 0 : index
    %c0_7 = arith.constant 0 : index
    %8 = vector.load %arg4[%c0_6, %c0_7] : memref<24x128xf32, #tpu.memory_space<vmem>>, vector<24x128xf32>
    %cst = arith.constant dense<0.000000e+00> : vector<16x128xf32>
    %9 = tpu.matmul %7, %8, %cst {dimension_numbers = #tpu.dot_dimension_numbers<[1], [0], [0], [1], [0, 0, 1, 1], [], []>} : vector<16x24xf32>, vector<24x128xf32>, vector<16x128xf32> -> vector<16x128xf32>
    %c0_8 = arith.constant 0 : index
    %c0_9 = arith.constant 0 : index
    %10 = vector.load %arg5[%c0_8, %c0_9] : memref<1x128xf32, #tpu.memory_space<vmem>>, vector<1x128xf32>
    %11 = vector.broadcast %10 : vector<1x128xf32> to vector<16x128xf32>
    %12 = arith.addf %9, %11 : vector<16x128xf32>
    %cst_10 = arith.constant 0.000000e+00 : f32
    %13 = vector.broadcast %cst_10 : f32 to vector<16x128xf32>
    %14 = arith.maximumf %12, %13 : vector<16x128xf32>
    %c0_11 = arith.constant 0 : index
    %c0_12 = arith.constant 0 : index
    %c0_13 = arith.constant 0 : index
    %15 = vector.load %arg6[%c0_11, %c0_12, %c0_13] : memref<9x128x128xf32, #tpu.memory_space<vmem>>, vector<1x128x128xf32>
    %16 = vector.shape_cast %15 : vector<1x128x128xf32> to vector<128x128xf32>
    %cst_14 = arith.constant dense<0.000000e+00> : vector<16x128xf32>
    %17 = tpu.matmul %14, %16, %cst_14 {dimension_numbers = #tpu.dot_dimension_numbers<[1], [0], [0], [1], [0, 0, 1, 1], [], []>} : vector<16x128xf32>, vector<128x128xf32>, vector<16x128xf32> -> vector<16x128xf32>
    %c0_15 = arith.constant 0 : index
    %c0_16 = arith.constant 0 : index
    %c0_17 = arith.constant 0 : index
    %18 = vector.load %arg8[%c0_15, %c0_16, %c0_17] : memref<9x16x16xf32, #tpu.memory_space<vmem>>, vector<1x16x16xf32>
    %19 = vector.shape_cast %18 : vector<1x16x16xf32> to vector<16x16xf32>
    %cst_18 = arith.constant dense<0.000000e+00> : vector<16x128xf32>
    %20 = tpu.matmul %19, %17, %cst_18 {dimension_numbers = #tpu.dot_dimension_numbers<[1], [0], [0], [1], [0, 0, 1, 1], [], []>} : vector<16x16xf32>, vector<16x128xf32>, vector<16x128xf32> -> vector<16x128xf32>
    %c0_19 = arith.constant 0 : index
    %c0_20 = arith.constant 0 : index
    %21 = vector.load %arg7[%c0_19, %c0_20] : memref<1x128xf32, #tpu.memory_space<vmem>>, vector<1x128xf32>
    %22 = vector.broadcast %21 : vector<1x128xf32> to vector<16x128xf32>
    %23 = arith.addf %20, %22 : vector<16x128xf32>
    %c1 = arith.constant 1 : index
    %c0_21 = arith.constant 0 : index
    %c0_22 = arith.constant 0 : index
    %24 = vector.load %arg6[%c1, %c0_21, %c0_22] : memref<9x128x128xf32, #tpu.memory_space<vmem>>, vector<1x128x128xf32>
    %25 = vector.shape_cast %24 : vector<1x128x128xf32> to vector<128x128xf32>
    %cst_23 = arith.constant dense<0.000000e+00> : vector<16x128xf32>
    %26 = tpu.matmul %14, %25, %cst_23 {dimension_numbers = #tpu.dot_dimension_numbers<[1], [0], [0], [1], [0, 0, 1, 1], [], []>} : vector<16x128xf32>, vector<128x128xf32>, vector<16x128xf32> -> vector<16x128xf32>
    %c1_24 = arith.constant 1 : index
    %c0_25 = arith.constant 0 : index
    %c0_26 = arith.constant 0 : index
    %27 = vector.load %arg8[%c1_24, %c0_25, %c0_26] : memref<9x16x16xf32, #tpu.memory_space<vmem>>, vector<1x16x16xf32>
    %28 = vector.shape_cast %27 : vector<1x16x16xf32> to vector<16x16xf32>
    %cst_27 = arith.constant dense<0.000000e+00> : vector<16x128xf32>
    %29 = tpu.matmul %28, %26, %cst_27 {dimension_numbers = #tpu.dot_dimension_numbers<[1], [0], [0], [1], [0, 0, 1, 1], [], []>} : vector<16x16xf32>, vector<16x128xf32>, vector<16x128xf32> -> vector<16x128xf32>
    %30 = arith.addf %23, %29 : vector<16x128xf32>
    %c2 = arith.constant 2 : index
    %c0_28 = arith.constant 0 : index
    %c0_29 = arith.constant 0 : index
    %31 = vector.load %arg6[%c2, %c0_28, %c0_29] : memref<9x128x128xf32, #tpu.memory_space<vmem>>, vector<1x128x128xf32>
    %32 = vector.shape_cast %31 : vector<1x128x128xf32> to vector<128x128xf32>
    %cst_30 = arith.constant dense<0.000000e+00> : vector<16x128xf32>
    %33 = tpu.matmul %14, %32, %cst_30 {dimension_numbers = #tpu.dot_dimension_numbers<[1], [0], [0], [1], [0, 0, 1, 1], [], []>} : vector<16x128xf32>, vector<128x128xf32>, vector<16x128xf32> -> vector<16x128xf32>
    %c2_31 = arith.constant 2 : index
    %c0_32 = arith.constant 0 : index
    %c0_33 = arith.constant 0 : index
    %34 = vector.load %arg8[%c2_31, %c0_32, %c0_33] : memref<9x16x16xf32, #tpu.memory_space<vmem>>, vector<1x16x16xf32>
    %35 = vector.shape_cast %34 : vector<1x16x16xf32> to vector<16x16xf32>
    %cst_34 = arith.constant dense<0.000000e+00> : vector<16x128xf32>
    %36 = tpu.matmul %35, %33, %cst_34 {dimension_numbers = #tpu.dot_dimension_numbers<[1], [0], [0], [1], [0, 0, 1, 1], [], []>} : vector<16x16xf32>, vector<16x128xf32>, vector<16x128xf32> -> vector<16x128xf32>
    %37 = arith.addf %30, %36 : vector<16x128xf32>
    %c3 = arith.constant 3 : index
    %c0_35 = arith.constant 0 : index
    %c0_36 = arith.constant 0 : index
    %38 = vector.load %arg6[%c3, %c0_35, %c0_36] : memref<9x128x128xf32, #tpu.memory_space<vmem>>, vector<1x128x128xf32>
    %39 = vector.shape_cast %38 : vector<1x128x128xf32> to vector<128x128xf32>
    %cst_37 = arith.constant dense<0.000000e+00> : vector<16x128xf32>
    %40 = tpu.matmul %14, %39, %cst_37 {dimension_numbers = #tpu.dot_dimension_numbers<[1], [0], [0], [1], [0, 0, 1, 1], [], []>} : vector<16x128xf32>, vector<128x128xf32>, vector<16x128xf32> -> vector<16x128xf32>
    %c3_38 = arith.constant 3 : index
    %c0_39 = arith.constant 0 : index
    %c0_40 = arith.constant 0 : index
    %41 = vector.load %arg8[%c3_38, %c0_39, %c0_40] : memref<9x16x16xf32, #tpu.memory_space<vmem>>, vector<1x16x16xf32>
    %42 = vector.shape_cast %41 : vector<1x16x16xf32> to vector<16x16xf32>
    %cst_41 = arith.constant dense<0.000000e+00> : vector<16x128xf32>
    %43 = tpu.matmul %42, %40, %cst_41 {dimension_numbers = #tpu.dot_dimension_numbers<[1], [0], [0], [1], [0, 0, 1, 1], [], []>} : vector<16x16xf32>, vector<16x128xf32>, vector<16x128xf32> -> vector<16x128xf32>
    %44 = arith.addf %37, %43 : vector<16x128xf32>
    %c4 = arith.constant 4 : index
    %c0_42 = arith.constant 0 : index
    %c0_43 = arith.constant 0 : index
    %45 = vector.load %arg6[%c4, %c0_42, %c0_43] : memref<9x128x128xf32, #tpu.memory_space<vmem>>, vector<1x128x128xf32>
    %46 = vector.shape_cast %45 : vector<1x128x128xf32> to vector<128x128xf32>
    %cst_44 = arith.constant dense<0.000000e+00> : vector<16x128xf32>
    %47 = tpu.matmul %14, %46, %cst_44 {dimension_numbers = #tpu.dot_dimension_numbers<[1], [0], [0], [1], [0, 0, 1, 1], [], []>} : vector<16x128xf32>, vector<128x128xf32>, vector<16x128xf32> -> vector<16x128xf32>
    %c4_45 = arith.constant 4 : index
    %c0_46 = arith.constant 0 : index
    %c0_47 = arith.constant 0 : index
    %48 = vector.load %arg8[%c4_45, %c0_46, %c0_47] : memref<9x16x16xf32, #tpu.memory_space<vmem>>, vector<1x16x16xf32>
    %49 = vector.shape_cast %48 : vector<1x16x16xf32> to vector<16x16xf32>
    %cst_48 = arith.constant dense<0.000000e+00> : vector<16x128xf32>
    %50 = tpu.matmul %49, %47, %cst_48 {dimension_numbers = #tpu.dot_dimension_numbers<[1], [0], [0], [1], [0, 0, 1, 1], [], []>} : vector<16x16xf32>, vector<16x128xf32>, vector<16x128xf32> -> vector<16x128xf32>
    %51 = arith.addf %44, %50 : vector<16x128xf32>
    %c5 = arith.constant 5 : index
    %c0_49 = arith.constant 0 : index
    %c0_50 = arith.constant 0 : index
    %52 = vector.load %arg6[%c5, %c0_49, %c0_50] : memref<9x128x128xf32, #tpu.memory_space<vmem>>, vector<1x128x128xf32>
    %53 = vector.shape_cast %52 : vector<1x128x128xf32> to vector<128x128xf32>
    %cst_51 = arith.constant dense<0.000000e+00> : vector<16x128xf32>
    %54 = tpu.matmul %14, %53, %cst_51 {dimension_numbers = #tpu.dot_dimension_numbers<[1], [0], [0], [1], [0, 0, 1, 1], [], []>} : vector<16x128xf32>, vector<128x128xf32>, vector<16x128xf32> -> vector<16x128xf32>
    %c5_52 = arith.constant 5 : index
    %c0_53 = arith.constant 0 : index
    %c0_54 = arith.constant 0 : index
    %55 = vector.load %arg8[%c5_52, %c0_53, %c0_54] : memref<9x16x16xf32, #tpu.memory_space<vmem>>, vector<1x16x16xf32>
    %56 = vector.shape_cast %55 : vector<1x16x16xf32> to vector<16x16xf32>
    %cst_55 = arith.constant dense<0.000000e+00> : vector<16x128xf32>
    %57 = tpu.matmul %56, %54, %cst_55 {dimension_numbers = #tpu.dot_dimension_numbers<[1], [0], [0], [1], [0, 0, 1, 1], [], []>} : vector<16x16xf32>, vector<16x128xf32>, vector<16x128xf32> -> vector<16x128xf32>
    %58 = arith.addf %51, %57 : vector<16x128xf32>
    %c6 = arith.constant 6 : index
    %c0_56 = arith.constant 0 : index
    %c0_57 = arith.constant 0 : index
    %59 = vector.load %arg6[%c6, %c0_56, %c0_57] : memref<9x128x128xf32, #tpu.memory_space<vmem>>, vector<1x128x128xf32>
    %60 = vector.shape_cast %59 : vector<1x128x128xf32> to vector<128x128xf32>
    %cst_58 = arith.constant dense<0.000000e+00> : vector<16x128xf32>
    %61 = tpu.matmul %14, %60, %cst_58 {dimension_numbers = #tpu.dot_dimension_numbers<[1], [0], [0], [1], [0, 0, 1, 1], [], []>} : vector<16x128xf32>, vector<128x128xf32>, vector<16x128xf32> -> vector<16x128xf32>
    %c6_59 = arith.constant 6 : index
    %c0_60 = arith.constant 0 : index
    %c0_61 = arith.constant 0 : index
    %62 = vector.load %arg8[%c6_59, %c0_60, %c0_61] : memref<9x16x16xf32, #tpu.memory_space<vmem>>, vector<1x16x16xf32>
    %63 = vector.shape_cast %62 : vector<1x16x16xf32> to vector<16x16xf32>
    %cst_62 = arith.constant dense<0.000000e+00> : vector<16x128xf32>
    %64 = tpu.matmul %63, %61, %cst_62 {dimension_numbers = #tpu.dot_dimension_numbers<[1], [0], [0], [1], [0, 0, 1, 1], [], []>} : vector<16x16xf32>, vector<16x128xf32>, vector<16x128xf32> -> vector<16x128xf32>
    %65 = arith.addf %58, %64 : vector<16x128xf32>
    %c7 = arith.constant 7 : index
    %c0_63 = arith.constant 0 : index
    %c0_64 = arith.constant 0 : index
    %66 = vector.load %arg6[%c7, %c0_63, %c0_64] : memref<9x128x128xf32, #tpu.memory_space<vmem>>, vector<1x128x128xf32>
    %67 = vector.shape_cast %66 : vector<1x128x128xf32> to vector<128x128xf32>
    %cst_65 = arith.constant dense<0.000000e+00> : vector<16x128xf32>
    %68 = tpu.matmul %14, %67, %cst_65 {dimension_numbers = #tpu.dot_dimension_numbers<[1], [0], [0], [1], [0, 0, 1, 1], [], []>} : vector<16x128xf32>, vector<128x128xf32>, vector<16x128xf32> -> vector<16x128xf32>
    %c7_66 = arith.constant 7 : index
    %c0_67 = arith.constant 0 : index
    %c0_68 = arith.constant 0 : index
    %69 = vector.load %arg8[%c7_66, %c0_67, %c0_68] : memref<9x16x16xf32, #tpu.memory_space<vmem>>, vector<1x16x16xf32>
    %70 = vector.shape_cast %69 : vector<1x16x16xf32> to vector<16x16xf32>
    %cst_69 = arith.constant dense<0.000000e+00> : vector<16x128xf32>
    %71 = tpu.matmul %70, %68, %cst_69 {dimension_numbers = #tpu.dot_dimension_numbers<[1], [0], [0], [1], [0, 0, 1, 1], [], []>} : vector<16x16xf32>, vector<16x128xf32>, vector<16x128xf32> -> vector<16x128xf32>
    %72 = arith.addf %65, %71 : vector<16x128xf32>
    %c8 = arith.constant 8 : index
    %c0_70 = arith.constant 0 : index
    %c0_71 = arith.constant 0 : index
    %73 = vector.load %arg6[%c8, %c0_70, %c0_71] : memref<9x128x128xf32, #tpu.memory_space<vmem>>, vector<1x128x128xf32>
    %74 = vector.shape_cast %73 : vector<1x128x128xf32> to vector<128x128xf32>
    %cst_72 = arith.constant dense<0.000000e+00> : vector<16x128xf32>
    %75 = tpu.matmul %14, %74, %cst_72 {dimension_numbers = #tpu.dot_dimension_numbers<[1], [0], [0], [1], [0, 0, 1, 1], [], []>} : vector<16x128xf32>, vector<128x128xf32>, vector<16x128xf32> -> vector<16x128xf32>
    %c8_73 = arith.constant 8 : index
    %c0_74 = arith.constant 0 : index
    %c0_75 = arith.constant 0 : index
    %76 = vector.load %arg8[%c8_73, %c0_74, %c0_75] : memref<9x16x16xf32, #tpu.memory_space<vmem>>, vector<1x16x16xf32>
    %77 = vector.shape_cast %76 : vector<1x16x16xf32> to vector<16x16xf32>
    %cst_76 = arith.constant dense<0.000000e+00> : vector<16x128xf32>
    %78 = tpu.matmul %77, %75, %cst_76 {dimension_numbers = #tpu.dot_dimension_numbers<[1], [0], [0], [1], [0, 0, 1, 1], [], []>} : vector<16x16xf32>, vector<16x128xf32>, vector<16x128xf32> -> vector<16x128xf32>
    %79 = arith.addf %72, %78 : vector<16x128xf32>
    %cst_77 = arith.constant 0.000000e+00 : f32
    %80 = vector.broadcast %cst_77 : f32 to vector<16x128xf32>
    %81 = arith.maximumf %79, %80 : vector<16x128xf32>
    %c0_78 = arith.constant 0 : index
    %c0_79 = arith.constant 0 : index
    %c0_80 = arith.constant 0 : index
    %82 = vector.load %arg9[%c0_78, %c0_79, %c0_80] : memref<1x16x128xf32, #tpu.memory_space<vmem>>, vector<1x16x128xf32>
    %83 = vector.shape_cast %82 : vector<1x16x128xf32> to vector<16x128xf32>
    %84 = vector.shape_cast %81 : vector<16x128xf32> to vector<1x16x128xf32>
    tpu.vector_store %arg9[%c0_78, %c0_79, %c0_80], %84 {strides = array<i32>} : memref<1x16x128xf32, #tpu.memory_space<vmem>>, vector<1x16x128xf32>,
    return
  }
  func.func @transform_0(%arg0: i32) -> (i32, i32, i32) {
    %c0_i32 = arith.constant 0 : i32
    %c0_i32_0 = arith.constant 0 : i32
    %c0_i32_1 = arith.constant 0 : i32
    return %arg0, %c0_i32, %c0_i32_0 : i32, i32, i32
  }
  func.func @transform_1(%arg0: i32) -> (i32, i32) {
    %c0_i32 = arith.constant 0 : i32
    %c0_i32_0 = arith.constant 0 : i32
    %c0_i32_1 = arith.constant 0 : i32
    return %c0_i32, %c0_i32_0 : i32, i32
  }
  func.func @transform_2(%arg0: i32) -> (i32, i32) {
    %c0_i32 = arith.constant 0 : i32
    %c0_i32_0 = arith.constant 0 : i32
    %c0_i32_1 = arith.constant 0 : i32
    return %c0_i32, %c0_i32_0 : i32, i32
  }
  func.func @transform_3(%arg0: i32) -> (i32, i32) {
    %c0_i32 = arith.constant 0 : i32
    %c0_i32_0 = arith.constant 0 : i32
    %c0_i32_1 = arith.constant 0 : i32
    return %c0_i32, %c0_i32_0 : i32, i32
  }
  func.func @transform_4(%arg0: i32) -> (i32, i32) {
    %c0_i32 = arith.constant 0 : i32
    %c0_i32_0 = arith.constant 0 : i32
    %c0_i32_1 = arith.constant 0 : i32
    return %c0_i32, %c0_i32_0 : i32, i32
  }
  func.func @transform_5(%arg0: i32) -> (i32, i32, i32) {
    %c0_i32 = arith.constant 0 : i32
    %c0_i32_0 = arith.constant 0 : i32
    %c0_i32_1 = arith.constant 0 : i32
    %c0_i32_2 = arith.constant 0 : i32
    return %c0_i32, %c0_i32_0, %c0_i32_1 : i32, i32, i32
  }
  func.func @transform_6(%arg0: i32) -> (i32, i32) {
    %c0_i32 = arith.constant 0 : i32
    %c0_i32_0 = arith.constant 0 : i32
    %c0_i32_1 = arith.constant 0 : i32
    return %c0_i32, %c0_i32_0 : i32, i32
  }
  func.func @transform_7(%arg0: i32) -> (i32, i32, i32) {
    %c0_i32 = arith.constant 0 : i32
    %c0_i32_0 = arith.constant 0 : i32
    %c0_i32_1 = arith.constant 0 : i32
    %c0_i32_2 = arith.constant 0 : i32
    return %c0_i32, %c0_i32_0, %c0_i32_1 : i32, i32, i32
  }
  func.func @transform_8(%arg0: i32) -> (i32, i32, i32) {
    %c0_i32 = arith.constant 0 : i32
    %c0_i32_0 = arith.constant 0 : i32
    %c0_i32_1 = arith.constant 0 : i32
    return %arg0, %c0_i32, %c0_i32_0 : i32, i32, i32
  }
}

</mosaic_0001>

<bundles_post_ra>
// kernel: tpu_custom_call.1
= control target key start
LH: loop header
LB: loop body
LE: loop exit
PB: predicated region body
PF: predicated region fallthrough
CT: control target
= control target key end

     0   :  { %s3451_s0 = inlined_call_operand.hbm [shape: f32[2,16,24], index: 0, kind: input, shape index: {}]   ;;  %s3452_s1 = inlined_call_operand.vmem [shape: f32[1,24], index: 1, kind: input, shape index: {}]   ;;  %s3453_s2 = inlined_call_operand.vmem [shape: f32[1,24], index: 2, kind: input, shape index: {}]   ;;  %s3454_s3 = inlined_call_operand.hbm [shape: f32[24,128], index: 3, kind: input, shape index: {}]   ;;  %s3455_s4 = inlined_call_operand.vmem [shape: f32[1,128], index: 4, kind: input, shape index: {}]   ;;  %s3456_s5 = inlined_call_operand.hbm [shape: f32[9,128,128], index: 5, kind: input, shape index: {}]   ;;  %s3457_s6 = inlined_call_operand.vmem [shape: f32[1,128], index: 6, kind: input, shape index: {}]   ;;  %s3458_s7 = inlined_call_operand.hbm [shape: f32[9,16,16], index: 7, kind: input, shape index: {}]   ;;  %s3459_s8 = inlined_call_operand.hbm [shape: f32[2,16,128], index: 8, kind: output, shape index: {}]  }
   0x1   :  { %3466 = sst [smem:[#allocation15_spill]] %s3454_s3 }
   0x2   :  { %3467 = sst [smem:[#allocation16_spill]] %s3456_s5 }
   0x3   :  { %13 = vsyncpa [#allocation3], 0 }
   0x4   :  { %15 = vsyncpa [#allocation3 + $0x1], 0 }
   0x5   :  { %16 = vsyncpa [#allocation6], 0 }
   0x6   :  { %17 = vsyncpa [#allocation9], 0 }
   0x7   :  { %18 = vsyncpa [#allocation4], 0 }
   0x8   :  { %20 = vsyncpa [#allocation4 + $0x1], 0  ;;  %s3159_s27 = smov 0   ;;  %s3161_s28 = smov 0  }
   0x9   :  { %s3163_s29 = smov 0   ;;  %s3165_s30 = smov 0  }
   0xa LB: > { %s3180_s9 = sadd.s32 4294967295, %s3103_s30   ;;  %s2208_s10 = sadd.s32 4294967294, %s3103_s30   ;;  %s3103_s30 = sphi %s3165_s30, %s3490_s30   ;;  %s3099_s29 = sphi %s3163_s29, %s3489_s29   ;;  %s3095_s28 = sphi %s3161_s28, %s3488_s28   ;;  %s3091_s27 = sphi %s3159_s27, %s3487_s27  }
   0xb   : > { %p46_p0 = scmp.ne.s32.totalorder %s3095_s28, %s3091_s27  ;;  %p3460_p1 = scmp.eq.s32.totalorder %s3180_s9, 0 }
   0xc   : > { %p217_p2 = scmp.eq.s32.totalorder %s3180_s9, 1  ;;  %p223_p3 = scmp.eq.s32.totalorder %s2208_s10, 1 }
   0xd   : > { %p3189_p4 = por %p3460_p1, %p46_p0  ;;  %p2209_p5 = scmp.ge.s32.totalorder %s3103_s30, 1 }
   0xe   : > { %p3194_p6 = por %p223_p3, %p46_p0  ;;  %p230_p7 = scmp.lt.s32.totalorder %s3103_s30, 3 }
   0xf   : > { %s3468_s11 = scalar_select %p3189_p4, 1, 0 }
  0x10   : > { %s3469_s12 = scalar_select %p3194_p6, 1, 0 }
  0x11   : > { %p3199_p8 = pnand %p2209_p5, %p230_p7  ;;  %s3105_s14 = smov [#allocation5]  }
  0x12   : > { %s248_s15 = sshll.u32 %s3105_s14, 4  ;;  %s3106_s17 = smov [#allocation7]   ;;  %s249_s15 = int_to_ptr.vmem [resolvable:$true] %s248_s15 }
  0x13   : > { %s3470_s13 = scalar_select %p3199_p8, 1, 0 }
  0x14   : > { %p2860_p9 = pneg %p3199_p8  ;;  %s264_s18 = sshll.u32 %s3106_s17, 4  ;;  %s265_s18 = int_to_ptr.vmem [resolvable:$true] %s264_s18 }
  0x15   : > { %s3107_s19 = smov [#allocation8]   ;;  %s2936_s21 = scalar_lea.vmem %s249_s15, 384 }
  0x16   : > { %p3208_p11 = pnand %p2860_p9, %p3460_p1  ;;  %s280_s20 = sshll.u32 %s3107_s19, 4  ;;  %s281_s20 = int_to_ptr.vmem [resolvable:$true] %s280_s20 }
  0x17   : > { %p2937_p13 = scmp.ne.s32.totalorder %s249_s15, %s2936_s21  ;;  %p2944_p5 = scmp.lt.s32.totalorder %s249_s15, %s249_s15 }
  0x18   : > { %p2927_p12 = pneg %p3208_p11  ;;  %p2945_p7 = scmp.lt.s32.totalorder %s2936_s21, %s2936_s21 }
  0x1a   : > { %p2939_p0 = pnand %p2937_p13, %p2927_p12  ;;  %p2946_p9 = por %p2945_p7, %p2944_p5 }
  0x1c   : > { %p2940_p3 = pneg %p2939_p0 }
  0x1e   : > { %p2947_p10 = pnand %p2946_p9, %p2940_p3 }
  0x20   : > { %2950 = shalt.err (!%p2947_p10)
}
  0x21   : > { %s3461_s22 = smov 128   ;;  %s3462_s23 = smov 8  }
  0x22   : > { %s3472_s3 = sld [smem:[#allocation15_spill]]  ;;  %s2962_s26 = scalar_lea.vmem %s265_s18, 18432 }
  0x23   : > { %p2963_p13 = scmp.ne.s32.totalorder %s265_s18, %s2962_s26  ;;  %p2970_p3 = scmp.lt.s32.totalorder %s265_s18, %s265_s18 }
  0x24   : > { %p2971_p10 = scmp.lt.s32.totalorder %s2962_s26, %s2962_s26 }
  0x25   : > { %p2965_p0 = pnand %p2963_p13, %p2927_p12 }
  0x26   : > { %p2972_p7 = por %p2971_p10, %p2970_p3 }
  0x27   : > { %p2966_p5 = pneg %p2965_p0 }
  0x28   : > { %2863 = dma.hbm_to_vmem [thread:$0]  (!%p3208_p11), %s3472_s3, 384, %s249_s15, [#allocation6], %s3461_s22, %s3461_s22, %s3462_s23  }
  0x29   : > { %p2973_p9 = pnand %p2972_p7, %p2966_p5 }
  0x2b   : > { %2976 = shalt.err (!%p2973_p9)
}
  0x2c   : > { %s3473_s5 = sld [smem:[#allocation16_spill]]  ;;  %s2988_s15 = scalar_lea.vmem %s281_s20, 2304 }
  0x2d   : > { %p2989_p1 = scmp.ne.s32.totalorder %s281_s20, %s2988_s15  ;;  %p2996_p3 = scmp.lt.s32.totalorder %s281_s20, %s281_s20 }
  0x2e   : > { %p2997_p5 = scmp.lt.s32.totalorder %s2988_s15, %s2988_s15 }
  0x2f   : > { %p2991_p13 = pnand %p2989_p1, %p2927_p12 }
  0x30   : > { %p2998_p10 = por %p2997_p5, %p2996_p3 }
  0x31   : > { %p2992_p0 = pneg %p2991_p13 }
  0x32   : > { %2866 = dma.hbm_to_vmem [thread:$0]  (!%p3208_p11), %s3473_s5, 18432, %s265_s18, [#allocation6], %s3461_s22, %s3461_s22, %s3462_s23  }
  0x33   : > { %p2999_p7 = pnand %p2998_p10, %p2992_p0 }
  0x35   : > { %3002 = shalt.err (!%p2999_p7)
}
  0x36   : > { %2869 = dma.hbm_to_vmem [thread:$0]  (!%p3208_p11), %s3458_s7, 2304, %s281_s20, [#allocation9], %s3461_s22, %s3461_s22, %s3462_s23  }
  0x37   : > { %s3248_s18 = sadd.s32 1, %s3103_s30   ;;  %s33_s21 = sadd.s32 1, %s3099_s29 }
  0x38   : > { %s30_s16 = ssub.s32 %s3103_s30, %s3248_s18  ;;  %p40_p12 = scmp.ne.s32.totalorder %s3099_s29, %s3095_s28 }
  0x39   : > { %p31_p1 = scmp.eq.s32.totalorder %s30_s16, 0  ;;  %p41_p9 = scmp.eq.s32.totalorder %s3103_s30, 0 }
  0x3a   : > { %p2881_p13 = scmp.lt.s32.totalorder %s3103_s30, 2  ;;  %p3262_p3 = por %p217_p2, %p40_p12 }
  0x3b   : > { %s3258_s24 = scalar_select %p31_p1, %s3099_s29, %s33_s21  }
  0x3c   : > { %p42_p0 = por %p41_p9, %p40_p12  ;;  %s294_s26 = sand.u32 1, %s3099_s29  }
  0x3d   : > { %s3474_s25 = scalar_select %p3262_p3, 1, 0 }
  0x3e   : > { %s2252_s10 = sshll.u32 %s3103_s30, 8  ;;  %s2214_s20 = sshll.u32 %s294_s26, 4 }
  0x3f   : > { %s3271_s17 = scalar_lea.hbm %s3451_s0, %s2252_s10  ;;  %s298_s19 = scalar_lea.vmem [#allocation2], %s2214_s20 }
  0x40   : > { %s305_s16 = sshll.u32 %s298_s19, 4  ;;  %p3273_p11 = pnand %p2881_p13, %p42_p0  ;;  %s3277_s16 = int_to_ptr.vmem [resolvable:$true] %s305_s16 }
  0x41   : > { %s3279_s22 = scalar_lea.sflag [#allocation3], %s294_s26  ;;  %s3003_s23 = scalar_lea.hbm %s3271_s17, 256 }
  0x42   : > { %p3004_p2 = scmp.ne.s32.totalorder %s3271_s17, %s3003_s23  ;;  %p3005_p5 = pneg %p3273_p11 }
  0x43   : > { %s3008_s20 = scalar_lea.hbm %s3451_s0, 512  ;;  %p3009_p1 = scmp.lt.s32.totalorder %s3271_s17, %s3451_s0 }
  0x44   : > { %p3006_p10 = pnand %p3005_p5, %p3004_p2  ;;  %p3010_p12 = scmp.lt.s32.totalorder %s3008_s20, %s3003_s23 }
  0x46   : > { %p3007_p7 = pneg %p3006_p10  ;;  %p3011_p9 = por %p3010_p12, %p3009_p1 }
  0x48   : > { %p3012_p13 = pnand %p3011_p9, %p3007_p7 }
  0x4a   : > { %3015 = shalt.err (!%p3012_p13)
}
  0x4b   : > { %s3016_s26 = scalar_lea.vmem %s3277_s16, 256  ;;  %s3110_s3 = smov [#allocation2]  }
  0x4c   : > { %p3017_p0 = scmp.ne.s32.totalorder %s3277_s16, %s3016_s26  ;;  %s3021_s5 = sshll.u32 %s3110_s3, 4  ;;  %s3022_s5 = int_to_ptr.vmem [resolvable:$false] %s3021_s5 }
  0x4d   : > { %s3023_s10 = scalar_lea.vmem %s3022_s5, 512  ;;  %p3024_p10 = scmp.lt.s32.totalorder %s3277_s16, %s3022_s5 }
  0x4e   : > { %p3019_p6 = pnand %p3017_p0, %p3005_p5  ;;  %p3025_p3 = scmp.lt.s32.totalorder %s3023_s10, %s3016_s26 }
  0x50   : > { %p3020_p2 = pneg %p3019_p6  ;;  %p3026_p4 = por %p3025_p3, %p3024_p10 }
  0x52   : > { %p3027_p8 = pnand %p3026_p4, %p3020_p2 }
  0x54   : > { %3030 = shalt.err (!%p3027_p8)
}
  0x55   : > { %s3476_s23 = smov 8   ;;  %s3477_s14 = smov 128  }
  0x56   : > { %2873 = dma.hbm_to_vmem [thread:$0]  (!%p3273_p11), %s3271_s17, 256, %s3277_s16, %s3279_s22, %s3477_s14, %s3477_s14, %s3476_s23  }
  0x57   : > { %p3478_p6 = scmp.ne.s32.totalorder %s3470_s13, 0 }
  0x58   : > { %s3306_s3 = sand.u32 (!%p3478_p6), 1, %s3095_s28   ;;  %p3479_p4 = scmp.ne.s32.totalorder (!%p3478_p6), %s3468_s11, 0 }
  0x59   : > { %317 = sbr.rel (%p3478_p6) target bundleno = 1878 (0x756), region = 52  ;;  %s2218_s5 = sshll.u32 (!%p3478_p6), %s3306_s3, 4 }
  0x5a   : > { %s320_s20 = scalar_lea.sflag (!%p3478_p6), [#allocation3], %s3306_s3  ;;  %s323_s21 = scalar_lea.vmem (!%p3478_p6), [#allocation2], %s2218_s5 }
  0x5e   : > { %3074 = dma.done.wait (%p3479_p4), %s320_s20, 256  }
  0x5f   : > { %3076 = vsyncadd (%p3479_p4), %s320_s20, 4294967040  ;;  %p3480_p8 = scmp.eq.s32.totalorder %s3180_s9, 0 }
  0x61   : > { %3078 = dma.done.wait (%p3480_p8), [#allocation6], 18816   ;;  %p3481_p3 = pmov %p3480_p8 }
  0x63   : > { %3080 = vsyncadd (%p3481_p3), [#allocation6], 4294948480  ;;  %p3482_p11 = pmov %p3481_p3 }
  0x64   : > { %p3483_p5 = pmov %p3481_p3 }
  0x65   : > { %3082 = dma.done.wait (%p3482_p11), [#allocation9], 2304  }
  0x66   : > { %3084 = vsyncadd (%p3483_p5), [#allocation9], 4294964992  ;;  %v390_v0 = vld [vmem:[#allocation5 + $0x10] sm:$0xff]  ;;  %v389_v1 = vld [vmem:[#allocation5 + $0x8] sm:$0xff]  ;;  %vm398_vm0 = vcmask 195584   ;;  %vm582_vm1 = vcmask 130048  }
  0x67   : > { %v388_v2 = vld [vmem:[#allocation5] sm:$0xff]  ;;  %2457 = vmatprep.subr.mxu0 %v390_v0  ;;  %v369_v4 = vld [vmem:[%s323_s21 + $0x8] sm:$0xff]  ;;  %v497_v9 = vld [vmem:[#allocation7 + $0x78] sm:$0xff]  ;;  %s367_s10 = scalar_lea.vmem [#allocation10], %s2218_s5  ;;  %s2253_s14 = sshll.u32 %s3180_s9, 8 }
  0x68   : > { %v368_v3 = vld [vmem:[%s323_s21] sm:$0xff]  ;;  %2458 = vmatpush3.msra.mxu0 %v390_v0  ;;  %v496_v10 = vld [vmem:[#allocation7 + $0x70] sm:$0xff]  ;;  %2466 = vmatprep.subr.mxu1 %v497_v9  ;;  %v494_v14 = vld [vmem:[#allocation7 + $0x60] sm:$0xff]  ;;  %s2106_s23 = sshll.u32 %s367_s10, 4  ;;  %s3408_s11 = scalar_lea.hbm %s3459_s8, %s2253_s14  ;;  %s3403_s23 = int_to_ptr.vmem [resolvable:$true] %s2106_s23 }
  0x69   : > { %v2223_v5 = vld [vmem:[%s3452_s1] ss:$0 sm:$0xff]  ;;  %2459 = vmatprep.subr.mxu0 %v389_v1  ;;  %2467 = vmatpush3.msra.mxu1 %v497_v9  ;;  %v493_v15 = vld [vmem:[#allocation7 + $0x58] sm:$0xff]  ;;  %v492_v16 = vld [vmem:[#allocation7 + $0x50] sm:$0xff]  ;;  %s2093_s5 = scalar_lea.sflag [#allocation4], %s3306_s3  ;;  %s3031_s13 = scalar_lea.vmem %s3403_s23, 256 }
  0x6a   : > { %v377_v6 = vmul.f32 %v2223_v5, %v368_v3  ;;  %v378_v7 = vmul.f32 %v2223_v5, %v369_v4  ;;  %v2224_v8 = vld [vmem:[%s3453_s2] ss:$0 sm:$0xff]  ;;  %2460 = vmatpush3.msra.mxu0 %v389_v1  ;;  %2468 = vmatprep.subr.mxu1 %v496_v10  ;;  %v490_v18 = vld [vmem:[#allocation7 + $0x40] sm:$0xff]  ;;  %v489_v19 = vld [vmem:[#allocation7 + $0x38] sm:$0xff]  ;;  %p3032_p7 = scmp.ne.s32.totalorder %s3403_s23, %s3031_s13  ;;  %p3484_p1 = scmp.ne.s32.totalorder %s3474_s25, 0 }
  0x6b   : > { %2461 = vmatprep.subr.mxu0 %v388_v2  ;;  %v495_v13 = vld [vmem:[#allocation7 + $0x68] sm:$0xff]  ;;  %2469 = vmatpush3.msra.mxu1 %v496_v10  ;;  %v488_v20 = vld [vmem:[#allocation7 + $0x30] sm:$0xff]  ;;  %v486_v22 = vld [vmem:[#allocation7 + $0x20] sm:$0xff]  ;;  %s3111_s9 = smov [#allocation10]  }
  0x6c   : > { %v386_v11 = vadd.f32 %v2224_v8, %v377_v6  ;;  %v387_v12 = vadd.f32 %v2224_v8, %v378_v7  ;;  %2462 = vmatpush3.msra.mxu0 %v388_v2  ;;  %2470 = vmatprep.subr.mxu1 %v495_v13  ;;  %v491_v17 = vld [vmem:[#allocation7 + $0x48] sm:$0xff]  ;;  %v485_v23 = vld [vmem:[#allocation7 + $0x18] sm:$0xff]  ;;  %v484_v24 = vld [vmem:[#allocation7 + $0x10] sm:$0xff]  ;;  %p3033_p12 = pnand %p3032_p7, %p3484_p1  ;;  %s3035_s22 = sshll.u32 %s3111_s9, 4  ;;  %s3036_s22 = int_to_ptr.vmem [resolvable:$false] %s3035_s22 }
  0x6d   : > { %2471 = vmatpush3.msra.mxu1 %v495_v13  ;;  %v487_v21 = vld [vmem:[#allocation7 + $0x28] sm:$0xff]  ;;  %v482_v26 = vld [vmem:[#allocation7] sm:$0xff]  ;;  %v858_v27 = vld [vmem:[#allocation7 + $0x178] sm:$0xff]  ;;  %s3037_s17 = scalar_lea.vmem %s3036_s22, 512  ;;  %p3038_p13 = scmp.lt.s32.totalorder %s3403_s23, %s3036_s22 }
  0x6e   : > { %2463 = vmatprep.mubr.msk.f32.mxu0 %vm398_vm0, %v386_v11  ;;  %2472 = vmatprep.subr.mxu1 %v494_v14  ;;  %v483_v25 = vld [vmem:[#allocation7 + $0x8] sm:$0xff]  ;;  %v857_v35 = vld [vmem:[#allocation7 + $0x170] sm:$0xff]  ;;  %v855_v37 = vld [vmem:[#allocation7 + $0x160] sm:$0xff]  ;;  %p3034_p9 = pneg %p3033_p12  ;;  %p3039_p0 = scmp.lt.s32.totalorder %s3037_s17, %s3031_s13 }
  0x6f   : > { %2464 = vmatmul.mubr.msk.f32.vlgmr.msra.gmra.mxu0 %vm398_vm0, %v387_v12  ;;  %2473 = vmatpush3.msra.mxu1 %v494_v14  ;;  %v2225_v28 = vld [vmem:[%s3455_s4] ss:$0 sm:$0xff]  ;;  %v854_v38 = vld [vmem:[#allocation7 + $0x158] sm:$0xff]  ;;  %v853_v39 = vld [vmem:[#allocation7 + $0x150] sm:$0xff] }
  0x70   : > { %2474 = vmatprep.subr.mxu1 %v493_v15  ;;  %v856_v36 = vld [vmem:[#allocation7 + $0x168] sm:$0xff]  ;;  %v851_v41 = vld [vmem:[#allocation7 + $0x140] sm:$0xff]  ;;  %v850_v42 = vld [vmem:[#allocation7 + $0x138] sm:$0xff]  ;;  %p3040_p2 = por %p3039_p0, %p3038_p13 }
  0x71   : > { %2475 = vmatpush3.msra.mxu1 %v493_v15  ;;  %v852_v40 = vld [vmem:[#allocation7 + $0x148] sm:$0xff]  ;;  %v849_v43 = vld [vmem:[#allocation7 + $0x130] sm:$0xff]  ;;  %v847_v45 = vld [vmem:[#allocation7 + $0x120] sm:$0xff] }
  0x72   : > { %2476 = vmatprep.subr.mxu1 %v492_v16  ;;  %v848_v44 = vld [vmem:[#allocation7 + $0x128] sm:$0xff]  ;;  %v846_v46 = vld [vmem:[#allocation7 + $0x118] sm:$0xff]  ;;  %v845_v47 = vld [vmem:[#allocation7 + $0x110] sm:$0xff]  ;;  %p3041_p10 = pnand %p3040_p2, %p3034_p9 }
  0x73   : > { %2477 = vmatpush3.msra.mxu1 %v492_v16  ;;  %v844_v48 = vld [vmem:[#allocation7 + $0x108] sm:$0xff]  ;;  %v843_v49 = vld [vmem:[#allocation7 + $0x100] sm:$0xff]  ;;  %v1214_v50 = vld [vmem:[#allocation7 + $0x278] sm:$0xff] }
  0x74   : > { %2478 = vmatprep.subr.mxu1 %v491_v17  ;;  %v1213_v51 = vld [vmem:[#allocation7 + $0x270] sm:$0xff]  ;;  %v1212_v52 = vld [vmem:[#allocation7 + $0x268] sm:$0xff]  ;;  %v1211_v53 = vld [vmem:[#allocation7 + $0x260] sm:$0xff] }
  0x75   : > { %2479 = vmatpush3.msra.mxu1 %v491_v17  ;;  %v1210_v54 = vld [vmem:[#allocation7 + $0x258] sm:$0xff]  ;;  %v1209_v55 = vld [vmem:[#allocation7 + $0x250] sm:$0xff]  ;;  %v1208_v56 = vld [vmem:[#allocation7 + $0x248] sm:$0xff] }
  0x76   : > { %2480 = vmatprep.subr.mxu1 %v490_v18  ;;  %v1207_v57 = vld [vmem:[#allocation7 + $0x240] sm:$0xff]  ;;  %v1206_v58 = vld [vmem:[#allocation7 + $0x238] sm:$0xff]  ;;  %v1205_v59 = vld [vmem:[#allocation7 + $0x230] sm:$0xff] }
  0x77   : > { %2481 = vmatpush3.msra.mxu1 %v490_v18  ;;  %v1204_v60 = vld [vmem:[#allocation7 + $0x228] sm:$0xff]  ;;  %v1203_v61 = vld [vmem:[#allocation7 + $0x220] sm:$0xff]  ;;  %v1202_v62 = vld [vmem:[#allocation7 + $0x218] sm:$0xff] }
  0x78   : > { %2482 = vmatprep.subr.mxu1 %v489_v19  ;;  %v1201_v63 = vld [vmem:[#allocation7 + $0x210] sm:$0xff]  ;;  %v1200_v0 = vld [vmem:[#allocation7 + $0x208] sm:$0xff]  ;;  %v1199_v1 = vld [vmem:[#allocation7 + $0x200] sm:$0xff] }
  0x79   : > { %2483 = vmatpush3.msra.mxu1 %v489_v19  ;;  %v1570_v2 = vld [vmem:[#allocation7 + $0x378] sm:$0xff]  ;;  %v1569_v3 = vld [vmem:[#allocation7 + $0x370] sm:$0xff]  ;;  %v1568_v4 = vld [vmem:[#allocation7 + $0x368] sm:$0xff] }
  0x7a   : > { %2484 = vmatprep.subr.mxu1 %v488_v20  ;;  %v1567_v5 = vld [vmem:[#allocation7 + $0x360] sm:$0xff]  ;;  %v1566_v7 = vld [vmem:[#allocation7 + $0x358] sm:$0xff]  ;;  %v1565_v8 = vld [vmem:[#allocation7 + $0x350] sm:$0xff] }
  0x7b   : > { %2485 = vmatpush3.msra.mxu1 %v488_v20  ;;  %v573_v6 = vld [vmem:[#allocation8] sm:$0xff]  ;;  %v1564_v9 = vld [vmem:[#allocation7 + $0x348] sm:$0xff]  ;;  %v1562_v11 = vld [vmem:[#allocation7 + $0x338] sm:$0xff] }
  0x7c   : > { %2486 = vmatprep.subr.mxu1 %v487_v21  ;;  %2505 = vmatprep.mubr.msk.f32.mxu0 %vm582_vm1, %v573_v6  ;;  %v1563_v10 = vld [vmem:[#allocation7 + $0x340] sm:$0xff]  ;;  %v1561_v12 = vld [vmem:[#allocation7 + $0x330] sm:$0xff]  ;;  %v1560_v13 = vld [vmem:[#allocation7 + $0x328] sm:$0xff] }
  0x7d   : > { %2487 = vmatpush3.msra.mxu1 %v487_v21  ;;  %v1559_v14 = vld [vmem:[#allocation7 + $0x320] sm:$0xff]  ;;  %v1558_v15 = vld [vmem:[#allocation7 + $0x318] sm:$0xff]  ;;  %v1557_v16 = vld [vmem:[#allocation7 + $0x310] sm:$0xff] }
  0x7e   : > { %2488 = vmatprep.subr.mxu1 %v486_v22  ;;  %v1556_v17 = vld [vmem:[#allocation7 + $0x308] sm:$0xff]  ;;  %v1555_v18 = vld [vmem:[#allocation7 + $0x300] sm:$0xff] }
  0x7f   : > { %2489 = vmatpush3.msra.mxu1 %v486_v22  ;;  %v574_v21 = vld [vmem:[#allocation8 + $0x8] sm:$0xff]  ;;  %v680_v22 = vld [vmem:[#allocation7 + $0xf8] sm:$0xff] }
  0x80   : > { %2490 = vmatprep.subr.mxu1 %v485_v23 }
  0x81   : > { %2491 = vmatpush3.msra.mxu1 %v485_v23  ;;  %v679_v23 = vld [vmem:[#allocation7 + $0xf0] sm:$0xff] }
  0x82   : > { %2492 = vmatprep.subr.mxu1 %v484_v24 }
  0x83   : > { %2493 = vmatpush3.msra.mxu1 %v484_v24  ;;  %v678_v24 = vld [vmem:[#allocation7 + $0xe8] sm:$0xff] }
  0x84   : > { %2494 = vmatprep.subr.mxu1 %v483_v25 }
  0x85   : > { %2495 = vmatpush3.msra.mxu1 %v483_v25  ;;  %v677_v25 = vld [vmem:[#allocation7 + $0xe0] sm:$0xff] }
  0x86   : > { %2496 = vmatprep.subr.mxu1 %v482_v26 }
  0x87   : > { %2497 = vmatpush3.msra.mxu1 %v482_v26  ;;  %v676_v26 = vld [vmem:[#allocation7 + $0xd8] sm:$0xff] }
  0x88   : > { %2550 = vmatprep.subr.mxu1 %v858_v27 }
 0x12f   : > { %v2465_v29 = vpop.f32.mrf.mxu0 }
 0x130   : > { %v477_v30 = vadd.f32 %v2465_v29, %v2225_v28  ;;  %v673_v29 = vld [vmem:[#allocation7 + $0xc0] sm:$0xff] }
 0x131   : > { %v471_v31 = vpop.f32.mrf.mxu0 }
 0x132   : > { %v472_v32 = vadd.f32 %v2225_v28, %v471_v31  ;;  %v3335_v34 = vmax.f32 %v477_v30, 0.0  ;;  %v674_v28 = vld [vmem:[#allocation7 + $0xc8] sm:$0xff]  ;;  %v672_v30 = vld [vmem:[#allocation7 + $0xb8] sm:$0xff]  ;;  %v671_v31 = vld [vmem:[#allocation7 + $0xb0] sm:$0xff] }
 0x134   : > { %v3333_v33 = vmax.f32 %v472_v32, 0.0  ;;  %v670_v32 = vld [vmem:[#allocation7 + $0xa8] sm:$0xff] }
 0x136   : > { %2498 = vmatprep.mubr.f32.mxu1 %v3333_v33 }
 0x137   : > { %2499 = vmatmul.mubr.f32.vlgmr.msra.gmra.mxu1 %v3335_v34 }
 0x138   : > { %2551 = vmatpush3.msra.mxu1 %v858_v27  ;;  %2582 = vmatprep.mubr.f32.mxu1 %v3333_v33  ;;  %v675_v27 = vld [vmem:[#allocation7 + $0xd0] sm:$0xff] }
 0x139   : > { %2552 = vmatprep.subr.mxu1 %v857_v35 }
 0x13a   : > { %2553 = vmatpush3.msra.mxu1 %v857_v35  ;;  %v669_v35 = vld [vmem:[#allocation7 + $0xa0] sm:$0xff] }
 0x13b   : > { %2554 = vmatprep.subr.mxu1 %v856_v36 }
 0x13c   : > { %2555 = vmatpush3.msra.mxu1 %v856_v36  ;;  %v668_v36 = vld [vmem:[#allocation7 + $0x98] sm:$0xff] }
 0x13d   : > { %2556 = vmatprep.subr.mxu1 %v855_v37 }
 0x13e   : > { %2557 = vmatpush3.msra.mxu1 %v855_v37  ;;  %v667_v37 = vld [vmem:[#allocation7 + $0x90] sm:$0xff] }
 0x13f   : > { %2558 = vmatprep.subr.mxu1 %v854_v38 }
 0x140   : > { %2559 = vmatpush3.msra.mxu1 %v854_v38  ;;  %v666_v38 = vld [vmem:[#allocation7 + $0x88] sm:$0xff] }
 0x141   : > { %2560 = vmatprep.subr.mxu1 %v853_v39 }
 0x142   : > { %2561 = vmatpush3.msra.mxu1 %v853_v39  ;;  %v665_v39 = vld [vmem:[#allocation7 + $0x80] sm:$0xff] }
 0x143   : > { %2562 = vmatprep.subr.mxu1 %v852_v40 }
 0x144   : > { %2563 = vmatpush3.msra.mxu1 %v852_v40  ;;  %v757_v40 = vld [vmem:[#allocation8 + $0x10] sm:$0xff] }
 0x145   : > { %2564 = vmatprep.subr.mxu1 %v851_v41 }
 0x146   : > { %2565 = vmatpush3.msra.mxu1 %v851_v41 }
 0x147   : > { %2566 = vmatprep.subr.mxu1 %v850_v42 }
 0x148   : > { %2567 = vmatpush3.msra.mxu1 %v850_v42 }
 0x149   : > { %2568 = vmatprep.subr.mxu1 %v849_v43 }
 0x14a   : > { %2569 = vmatpush3.msra.mxu1 %v849_v43 }
 0x14b   : > { %2570 = vmatprep.subr.mxu1 %v848_v44 }
 0x14c   : > { %2571 = vmatpush3.msra.mxu1 %v848_v44 }
 0x14d   : > { %2572 = vmatprep.subr.mxu1 %v847_v45 }
 0x14e   : > { %2573 = vmatpush3.msra.mxu1 %v847_v45 }
 0x14f   : > { %2574 = vmatprep.subr.mxu1 %v846_v46 }
 0x150   : > { %2575 = vmatpush3.msra.mxu1 %v846_v46  ;;  %v758_v46 = vld [vmem:[#allocation8 + $0x18] sm:$0xff] }
 0x151   : > { %2576 = vmatprep.subr.mxu1 %v845_v47 }
 0x152   : > { %2577 = vmatpush3.msra.mxu1 %v845_v47  ;;  %v935_v47 = vld [vmem:[#allocation8 + $0x20] sm:$0xff] }
 0x153   : > { %2578 = vmatprep.subr.mxu1 %v844_v48 }
 0x154   : > { %2579 = vmatpush3.msra.mxu1 %v844_v48 }
 0x155   : > { %2580 = vmatprep.subr.mxu1 %v843_v49 }
 0x156   : > { %2581 = vmatpush3.msra.mxu1 %v843_v49  ;;  %v936_v49 = vld [vmem:[#allocation8 + $0x28] sm:$0xff] }
 0x157   : > { %2583 = vmatmul.mubr.f32.vlgmr.msra.gmra.mxu1 %v3335_v34  ;;  %2634 = vmatprep.subr.mxu1 %v1214_v50 }
 0x158   : > { %2635 = vmatpush3.msra.mxu1 %v1214_v50  ;;  %2666 = vmatprep.mubr.f32.mxu1 %v3333_v33  ;;  %v1036_v50 = vld [vmem:[#allocation7 + $0x1f8] sm:$0xff] }
 0x159   : > { %2636 = vmatprep.subr.mxu1 %v1213_v51 }
 0x15a   : > { %2637 = vmatpush3.msra.mxu1 %v1213_v51  ;;  %v1035_v51 = vld [vmem:[#allocation7 + $0x1f0] sm:$0xff] }
 0x15b   : > { %2638 = vmatprep.subr.mxu1 %v1212_v52 }
 0x15c   : > { %2639 = vmatpush3.msra.mxu1 %v1212_v52  ;;  %v1034_v52 = vld [vmem:[#allocation7 + $0x1e8] sm:$0xff] }
 0x15d   : > { %2640 = vmatprep.subr.mxu1 %v1211_v53 }
 0x15e   : > { %2641 = vmatpush3.msra.mxu1 %v1211_v53  ;;  %v1033_v53 = vld [vmem:[#allocation7 + $0x1e0] sm:$0xff] }
 0x15f   : > { %2642 = vmatprep.subr.mxu1 %v1210_v54 }
 0x160   : > { %2643 = vmatpush3.msra.mxu1 %v1210_v54  ;;  %v1032_v54 = vld [vmem:[#allocation7 + $0x1d8] sm:$0xff] }
 0x161   : > { %2644 = vmatprep.subr.mxu1 %v1209_v55 }
 0x162   : > { %2645 = vmatpush3.msra.mxu1 %v1209_v55  ;;  %v1031_v55 = vld [vmem:[#allocation7 + $0x1d0] sm:$0xff] }
 0x163   : > { %2646 = vmatprep.subr.mxu1 %v1208_v56 }
 0x164   : > { %2647 = vmatpush3.msra.mxu1 %v1208_v56  ;;  %v1030_v56 = vld [vmem:[#allocation7 + $0x1c8] sm:$0xff] }
 0x165   : > { %2648 = vmatprep.subr.mxu1 %v1207_v57 }
 0x166   : > { %2649 = vmatpush3.msra.mxu1 %v1207_v57  ;;  %v1029_v57 = vld [vmem:[#allocation7 + $0x1c0] sm:$0xff] }
 0x167   : > { %2650 = vmatprep.subr.mxu1 %v1206_v58 }
 0x168   : > { %2651 = vmatpush3.msra.mxu1 %v1206_v58  ;;  %v1028_v58 = vld [vmem:[#allocation7 + $0x1b8] sm:$0xff] }
 0x169   : > { %2652 = vmatprep.subr.mxu1 %v1205_v59 }
 0x16a   : > { %2653 = vmatpush3.msra.mxu1 %v1205_v59  ;;  %v1027_v59 = vld [vmem:[#allocation7 + $0x1b0] sm:$0xff] }
 0x16b   : > { %2654 = vmatprep.subr.mxu1 %v1204_v60 }
 0x16c   : > { %2655 = vmatpush3.msra.mxu1 %v1204_v60  ;;  %v1026_v60 = vld [vmem:[#allocation7 + $0x1a8] sm:$0xff] }
 0x16d   : > { %2656 = vmatprep.subr.mxu1 %v1203_v61 }
 0x16e   : > { %2657 = vmatpush3.msra.mxu1 %v1203_v61  ;;  %v1025_v61 = vld [vmem:[#allocation7 + $0x1a0] sm:$0xff] }
 0x16f   : > { %2658 = vmatprep.subr.mxu1 %v1202_v62 }
 0x170   : > { %2659 = vmatpush3.msra.mxu1 %v1202_v62  ;;  %v1024_v62 = vld [vmem:[#allocation7 + $0x198] sm:$0xff] }
 0x171   : > { %2660 = vmatprep.subr.mxu1 %v1201_v63 }
 0x172   : > { %2661 = vmatpush3.msra.mxu1 %v1201_v63  ;;  %v1023_v63 = vld [vmem:[#allocation7 + $0x190] sm:$0xff] }
 0x173   : > { %2662 = vmatprep.subr.mxu1 %v1200_v0 }
 0x174   : > { %2663 = vmatpush3.msra.mxu1 %v1200_v0  ;;  %v1022_v0 = vld [vmem:[#allocation7 + $0x188] sm:$0xff] }
 0x175   : > { %2664 = vmatprep.subr.mxu1 %v1199_v1 }
 0x176   : > { %2665 = vmatpush3.msra.mxu1 %v1199_v1  ;;  %v1021_v1 = vld [vmem:[#allocation7 + $0x180] sm:$0xff] }
 0x177   : > { %2667 = vmatmul.mubr.f32.vlgmr.msra.gmra.mxu1 %v3335_v34  ;;  %2718 = vmatprep.subr.mxu1 %v1570_v2 }
 0x178   : > { %2719 = vmatpush3.msra.mxu1 %v1570_v2  ;;  %2750 = vmatprep.mubr.f32.mxu1 %v3333_v33  ;;  %v1113_v2 = vld [vmem:[#allocation8 + $0x30] sm:$0xff] }
 0x179   : > { %2720 = vmatprep.subr.mxu1 %v1569_v3 }
 0x17a   : > { %2721 = vmatpush3.msra.mxu1 %v1569_v3  ;;  %v2228_v3 = vld [vmem:[%s3457_s6] ss:$0 sm:$0xff] }
 0x17b   : > { %2722 = vmatprep.subr.mxu1 %v1568_v4 }
 0x17c   : > { %2723 = vmatpush3.msra.mxu1 %v1568_v4 }
 0x17d   : > { %2724 = vmatprep.subr.mxu1 %v1567_v5 }
 0x17e   : > { %2725 = vmatpush3.msra.mxu1 %v1567_v5 }
 0x17f   : > { %2726 = vmatprep.subr.mxu1 %v1566_v7 }
 0x180   : > { %2727 = vmatpush3.msra.mxu1 %v1566_v7 }
 0x181   : > { %2728 = vmatprep.subr.mxu1 %v1565_v8 }
 0x182   : > { %2729 = vmatpush3.msra.mxu1 %v1565_v8 }
 0x183   : > { %2730 = vmatprep.subr.mxu1 %v1564_v9 }
 0x184   : > { %2731 = vmatpush3.msra.mxu1 %v1564_v9 }
 0x185   : > { %2732 = vmatprep.subr.mxu1 %v1563_v10 }
 0x186   : > { %2733 = vmatpush3.msra.mxu1 %v1563_v10 }
 0x187   : > { %2734 = vmatprep.subr.mxu1 %v1562_v11 }
 0x188   : > { %2735 = vmatpush3.msra.mxu1 %v1562_v11 }
 0x189   : > { %2736 = vmatprep.subr.mxu1 %v1561_v12 }
 0x18a   : > { %2737 = vmatpush3.msra.mxu1 %v1561_v12 }
 0x18b   : > { %2738 = vmatprep.subr.mxu1 %v1560_v13 }
 0x18c   : > { %2739 = vmatpush3.msra.mxu1 %v1560_v13 }
 0x18d   : > { %2740 = vmatprep.subr.mxu1 %v1559_v14 }
 0x18e   : > { %2741 = vmatpush3.msra.mxu1 %v1559_v14 }
 0x18f   : > { %2742 = vmatprep.subr.mxu1 %v1558_v15 }
 0x190   : > { %2743 = vmatpush3.msra.mxu1 %v1558_v15 }
 0x191   : > { %2744 = vmatprep.subr.mxu1 %v1557_v16 }
 0x192   : > { %2745 = vmatpush3.msra.mxu1 %v1557_v16 }
 0x193   : > { %2746 = vmatprep.subr.mxu1 %v1556_v17 }
 0x194   : > { %2747 = vmatpush3.msra.mxu1 %v1556_v17  ;;  %v1114_v17 = vld [vmem:[#allocation8 + $0x38] sm:$0xff] }
 0x195   : > { %2748 = vmatprep.subr.mxu1 %v1555_v18 }
 0x196   : > { %2749 = vmatpush3.msra.mxu1 %v1555_v18  ;;  %v1291_v18 = vld [vmem:[#allocation8 + $0x40] sm:$0xff] }
 0x197   : > { %2751 = vmatmul.mubr.f32.vlgmr.msra.gmra.mxu1 %v3335_v34 }
 0x1f7   : > { %v2500_v19 = vpop.f32.mrf.mxu1 }
 0x1f8   : > { %2501 = vmatprep.subr.mxu0 %v2500_v19 }
 0x1f9   : > { %v564_v20 = vpop.f32.mrf.mxu1  ;;  %2502 = vmatpush3.msra.mxu0 %v2500_v19 }
 0x1fa   : > { %2503 = vmatprep.subr.mxu0 %v564_v20 }
 0x1fb   : > { %2504 = vmatpush3.msra.mxu0 %v564_v20  ;;  %v1292_v20 = vld [vmem:[#allocation8 + $0x48] sm:$0xff] }
 0x1fc   : > { %2506 = vmatmul.mubr.msk.f32.vlgmr.msra.gmra.mxu0 %vm582_vm1, %v574_v21  ;;  %2508 = vmatprep.subr.mxu0 %v680_v22  ;;  %v1392_v21 = vld [vmem:[#allocation7 + $0x2f8] sm:$0xff] }
 0x1fd   : > { %2509 = vmatpush3.msra.mxu0 %v680_v22  ;;  %2540 = vmatprep.mubr.f32.mxu0 %v3333_v33  ;;  %v1391_v22 = vld [vmem:[#allocation7 + $0x2f0] sm:$0xff] }
 0x1fe   : > { %2510 = vmatprep.subr.mxu0 %v679_v23 }
 0x1ff   : > { %2511 = vmatpush3.msra.mxu0 %v679_v23  ;;  %v1390_v23 = vld [vmem:[#allocation7 + $0x2e8] sm:$0xff] }
 0x200   : > { %2512 = vmatprep.subr.mxu0 %v678_v24 }
 0x201   : > { %2513 = vmatpush3.msra.mxu0 %v678_v24  ;;  %v1389_v24 = vld [vmem:[#allocation7 + $0x2e0] sm:$0xff] }
 0x202   : > { %2514 = vmatprep.subr.mxu0 %v677_v25 }
 0x203   : > { %2515 = vmatpush3.msra.mxu0 %v677_v25  ;;  %v1388_v25 = vld [vmem:[#allocation7 + $0x2d8] sm:$0xff] }
 0x204   : > { %2516 = vmatprep.subr.mxu0 %v676_v26 }
 0x205   : > { %2517 = vmatpush3.msra.mxu0 %v676_v26  ;;  %v1387_v26 = vld [vmem:[#allocation7 + $0x2d0] sm:$0xff] }
 0x206   : > { %2518 = vmatprep.subr.mxu0 %v675_v27 }
 0x207   : > { %2519 = vmatpush3.msra.mxu0 %v675_v27  ;;  %v1386_v27 = vld [vmem:[#allocation7 + $0x2c8] sm:$0xff] }
 0x208   : > { %2520 = vmatprep.subr.mxu0 %v674_v28 }
 0x209   : > { %2521 = vmatpush3.msra.mxu0 %v674_v28  ;;  %v1385_v28 = vld [vmem:[#allocation7 + $0x2c0] sm:$0xff] }
 0x20a   : > { %2522 = vmatprep.subr.mxu0 %v673_v29 }
 0x20b   : > { %2523 = vmatpush3.msra.mxu0 %v673_v29  ;;  %v1384_v29 = vld [vmem:[#allocation7 + $0x2b8] sm:$0xff] }
 0x20c   : > { %2524 = vmatprep.subr.mxu0 %v672_v30 }
 0x20d   : > { %2525 = vmatpush3.msra.mxu0 %v672_v30  ;;  %v1383_v30 = vld [vmem:[#allocation7 + $0x2b0] sm:$0xff] }
 0x20e   : > { %2526 = vmatprep.subr.mxu0 %v671_v31 }
 0x20f   : > { %2527 = vmatpush3.msra.mxu0 %v671_v31  ;;  %v1382_v31 = vld [vmem:[#allocation7 + $0x2a8] sm:$0xff] }
 0x210   : > { %2528 = vmatprep.subr.mxu0 %v670_v32 }
 0x211   : > { %2529 = vmatpush3.msra.mxu0 %v670_v32  ;;  %v1381_v32 = vld [vmem:[#allocation7 + $0x2a0] sm:$0xff] }
 0x212   : > { %2530 = vmatprep.subr.mxu0 %v669_v35 }
 0x213   : > { %2531 = vmatpush3.msra.mxu0 %v669_v35  ;;  %v1380_v35 = vld [vmem:[#allocation7 + $0x298] sm:$0xff] }
 0x214   : > { %2532 = vmatprep.subr.mxu0 %v668_v36 }
 0x215   : > { %2533 = vmatpush3.msra.mxu0 %v668_v36  ;;  %v1379_v36 = vld [vmem:[#allocation7 + $0x290] sm:$0xff] }
 0x216   : > { %2534 = vmatprep.subr.mxu0 %v667_v37 }
 0x217   : > { %2535 = vmatpush3.msra.mxu0 %v667_v37  ;;  %v2584_v44 = vpop.f32.mrf.mxu1  ;;  %v1378_v37 = vld [vmem:[#allocation7 + $0x288] sm:$0xff] }
 0x218   : > { %2536 = vmatprep.subr.mxu0 %v666_v38 }
 0x219   : > { %2537 = vmatpush3.msra.mxu0 %v666_v38  ;;  %v925_v48 = vpop.f32.mrf.mxu1  ;;  %v1377_v38 = vld [vmem:[#allocation7 + $0x280] sm:$0xff] }
 0x21a   : > { %2538 = vmatprep.subr.mxu0 %v665_v39 }
 0x21b   : > { %2539 = vmatpush3.msra.mxu0 %v665_v39  ;;  %v1469_v39 = vld [vmem:[#allocation8 + $0x50] sm:$0xff] }
 0x21c   : > { %2541 = vmatmul.mubr.f32.vlgmr.msra.gmra.mxu0 %v3335_v34 }
 0x21d   : > { %2547 = vmatprep.mubr.msk.f32.mxu0 %vm582_vm1, %v757_v40 }
 0x237   : > { %v2668_v15 = vpop.f32.mrf.mxu1 }
 0x239   : > { %v1281_v19 = vpop.f32.mrf.mxu1 }
 0x2bc   : > { %v3350_v41 = vpop.f32.mrf.mxu0 }
 0x2bd   : > { %v661_v4 = vadd.f32 %v3350_v41, %v2228_v3 }
 0x2be   : > { %v3352_v42 = vpop.f32.mrf.mxu0 }
 0x2bf   : > { %v656_v6 = vadd.f32 %v2228_v3, %v3352_v42  ;;  %v1736_v3 = vld [vmem:[#allocation7 + $0x398] sm:$0xff] }
 0x2dc   : > { %v2542_v43 = vpop.f32.mrf.mxu0 }
 0x2dd   : > { %2543 = vmatprep.subr.mxu0 %v2542_v43 }
 0x2de   : > { %v747_v45 = vpop.f32.mrf.mxu0  ;;  %2544 = vmatpush3.msra.mxu0 %v2542_v43 }
 0x2df   : > { %2545 = vmatprep.subr.mxu0 %v747_v45 }
 0x2e0   : > { %2546 = vmatpush3.msra.mxu0 %v747_v45 }
 0x2e1   : > { %2548 = vmatmul.mubr.msk.f32.vlgmr.msra.gmra.mxu0 %vm582_vm1, %v758_v46  ;;  %2585 = vmatprep.subr.mxu0 %v2584_v44 }
 0x2e2   : > { %2586 = vmatpush3.msra.mxu0 %v2584_v44  ;;  %2589 = vmatprep.mubr.msk.f32.mxu0 %vm582_vm1, %v935_v47 }
 0x2e3   : > { %2587 = vmatprep.subr.mxu0 %v925_v48 }
 0x2e4   : > { %2588 = vmatpush3.msra.mxu0 %v925_v48 }
 0x2e5   : > { %2590 = vmatmul.mubr.msk.f32.vlgmr.msra.gmra.mxu0 %vm582_vm1, %v936_v49  ;;  %2592 = vmatprep.subr.mxu0 %v1036_v50  ;;  %v2752_v49 = vpop.f32.mrf.mxu1 }
 0x2e6   : > { %2593 = vmatpush3.msra.mxu0 %v1036_v50  ;;  %2624 = vmatprep.mubr.f32.mxu0 %v3333_v33 }
 0x2e7   : > { %2594 = vmatprep.subr.mxu0 %v1035_v51 }
 0x2e8   : > { %2595 = vmatpush3.msra.mxu0 %v1035_v51  ;;  %v1470_v51 = vld [vmem:[#allocation8 + $0x58] sm:$0xff] }
 0x2e9   : > { %2596 = vmatprep.subr.mxu0 %v1034_v52 }
 0x2ea   : > { %2597 = vmatpush3.msra.mxu0 %v1034_v52  ;;  %v1647_v52 = vld [vmem:[#allocation8 + $0x60] sm:$0xff] }
 0x2eb   : > { %2598 = vmatprep.subr.mxu0 %v1033_v53 }
 0x2ec   : > { %2599 = vmatpush3.msra.mxu0 %v1033_v53  ;;  %v1637_v53 = vpop.f32.mrf.mxu1 }
 0x2ed   : > { %2600 = vmatprep.subr.mxu0 %v1032_v54 }
 0x2ee   : > { %2601 = vmatpush3.msra.mxu0 %v1032_v54  ;;  %v1648_v54 = vld [vmem:[#allocation8 + $0x68] sm:$0xff] }
 0x2ef   : > { %2602 = vmatprep.subr.mxu0 %v1031_v55 }
 0x2f0   : > { %2603 = vmatpush3.msra.mxu0 %v1031_v55  ;;  %v1748_v55 = vld [vmem:[#allocation7 + $0x3f8] sm:$0xff] }
 0x2f1   : > { %2604 = vmatprep.subr.mxu0 %v1030_v56 }
 0x2f2   : > { %2605 = vmatpush3.msra.mxu0 %v1030_v56  ;;  %v1747_v56 = vld [vmem:[#allocation7 + $0x3f0] sm:$0xff] }
 0x2f3   : > { %2606 = vmatprep.subr.mxu0 %v1029_v57 }
 0x2f4   : > { %2607 = vmatpush3.msra.mxu0 %v1029_v57  ;;  %v1746_v57 = vld [vmem:[#allocation7 + $0x3e8] sm:$0xff] }
 0x2f5   : > { %2608 = vmatprep.subr.mxu0 %v1028_v58 }
 0x2f6   : > { %2609 = vmatpush3.msra.mxu0 %v1028_v58  ;;  %v1745_v58 = vld [vmem:[#allocation7 + $0x3e0] sm:$0xff] }
 0x2f7   : > { %2610 = vmatprep.subr.mxu0 %v1027_v59 }
 0x2f8   : > { %2611 = vmatpush3.msra.mxu0 %v1027_v59  ;;  %v1744_v59 = vld [vmem:[#allocation7 + $0x3d8] sm:$0xff] }
 0x2f9   : > { %2612 = vmatprep.subr.mxu0 %v1026_v60 }
 0x2fa   : > { %2613 = vmatpush3.msra.mxu0 %v1026_v60  ;;  %v1743_v60 = vld [vmem:[#allocation7 + $0x3d0] sm:$0xff] }
 0x2fb   : > { %2614 = vmatprep.subr.mxu0 %v1025_v61 }
 0x2fc   : > { %2615 = vmatpush3.msra.mxu0 %v1025_v61  ;;  %v1742_v61 = vld [vmem:[#allocation7 + $0x3c8] sm:$0xff] }
 0x2fd   : > { %2616 = vmatprep.subr.mxu0 %v1024_v62 }
 0x2fe   : > { %2617 = vmatpush3.msra.mxu0 %v1024_v62  ;;  %v1741_v62 = vld [vmem:[#allocation7 + $0x3c0] sm:$0xff] }
 0x2ff   : > { %2618 = vmatprep.subr.mxu0 %v1023_v63 }
 0x300   : > { %2619 = vmatpush3.msra.mxu0 %v1023_v63  ;;  %v1740_v63 = vld [vmem:[#allocation7 + $0x3b8] sm:$0xff] }
 0x301   : > { %2620 = vmatprep.subr.mxu0 %v1022_v0 }
 0x302   : > { %2621 = vmatpush3.msra.mxu0 %v1022_v0  ;;  %v1739_v0 = vld [vmem:[#allocation7 + $0x3b0] sm:$0xff] }
 0x303   : > { %2622 = vmatprep.subr.mxu0 %v1021_v1 }
 0x304   : > { %2623 = vmatpush3.msra.mxu0 %v1021_v1  ;;  %v1738_v1 = vld [vmem:[#allocation7 + $0x3a8] sm:$0xff] }
 0x305   : > { %2625 = vmatmul.mubr.f32.vlgmr.msra.gmra.mxu0 %v3335_v34 }
 0x306   : > { %2631 = vmatprep.mubr.msk.f32.mxu0 %vm582_vm1, %v1113_v2  ;;  %v1737_v2 = vld [vmem:[#allocation7 + $0x3a0] sm:$0xff] }
 0x3a1   : > { %v2549_v5 = vpop.f32.mrf.mxu0 }
 0x3a2   : > { %v841_v7 = vadd.f32 %v2549_v5, %v661_v4  ;;  %v1735_v4 = vld [vmem:[#allocation7 + $0x390] sm:$0xff]  ;;  %v1734_v5 = vld [vmem:[#allocation7 + $0x388] sm:$0xff] }
 0x3a3   : > { %v831_v8 = vpop.f32.mrf.mxu0 }
 0x3a4   : > { %v840_v9 = vadd.f32 %v831_v8, %v656_v6  ;;  %v1733_v6 = vld [vmem:[#allocation7 + $0x380] sm:$0xff] }
 0x3a5   : > { %v2591_v10 = vpop.f32.mrf.mxu0 }
 0x3a6   : > { %v3365_v11 = vadd.f32 %v2591_v10, %v841_v7  ;;  %v1825_v7 = vld [vmem:[#allocation8 + $0x70] sm:$0xff] }
 0x3a7   : > { %v1009_v12 = vpop.f32.mrf.mxu0  ;;  %2799 = vmatprep.mubr.msk.f32.mxu1 %vm582_vm1, %v1825_v7 }
 0x3a8   : > { %v3367_v13 = vadd.f32 %v1009_v12, %v840_v9 }
 0x3c5   : > { %v2626_v14 = vpop.f32.mrf.mxu0 }
 0x3c6   : > { %2627 = vmatprep.subr.mxu0 %v2626_v14 }
 0x3c7   : > { %v1103_v16 = vpop.f32.mrf.mxu0  ;;  %2628 = vmatpush3.msra.mxu0 %v2626_v14 }
 0x3c8   : > { %2629 = vmatprep.subr.mxu0 %v1103_v16 }
 0x3c9   : > { %2630 = vmatpush3.msra.mxu0 %v1103_v16 }
 0x3ca   : > { %2632 = vmatmul.mubr.msk.f32.vlgmr.msra.gmra.mxu0 %vm582_vm1, %v1114_v17  ;;  %2669 = vmatprep.subr.mxu0 %v2668_v15 }
 0x3cb   : > { %2670 = vmatpush3.msra.mxu0 %v2668_v15  ;;  %2673 = vmatprep.mubr.msk.f32.mxu0 %vm582_vm1, %v1291_v18  ;;  %v1826_v18 = vld [vmem:[#allocation8 + $0x78] sm:$0xff] }
 0x3cc   : > { %2671 = vmatprep.subr.mxu0 %v1281_v19 }
 0x3cd   : > { %2672 = vmatpush3.msra.mxu0 %v1281_v19  ;;  %v1926_v19 = vld [vmem:[#allocation7 + $0x478] sm:$0xff] }
 0x3ce   : > { %2674 = vmatmul.mubr.msk.f32.vlgmr.msra.gmra.mxu0 %vm582_vm1, %v1292_v20  ;;  %2676 = vmatprep.subr.mxu0 %v1392_v21  ;;  %v1925_v20 = vld [vmem:[#allocation7 + $0x470] sm:$0xff] }
 0x3cf   : > { %2677 = vmatpush3.msra.mxu0 %v1392_v21  ;;  %2708 = vmatprep.mubr.f32.mxu0 %v3333_v33  ;;  %v1924_v21 = vld [vmem:[#allocation7 + $0x468] sm:$0xff] }
 0x3d0   : > { %2678 = vmatprep.subr.mxu0 %v1391_v22 }
 0x3d1   : > { %2679 = vmatpush3.msra.mxu0 %v1391_v22  ;;  %v1923_v22 = vld [vmem:[#allocation7 + $0x460] sm:$0xff] }
 0x3d2   : > { %2680 = vmatprep.subr.mxu0 %v1390_v23 }
 0x3d3   : > { %2681 = vmatpush3.msra.mxu0 %v1390_v23  ;;  %v1922_v23 = vld [vmem:[#allocation7 + $0x458] sm:$0xff] }
 0x3d4   : > { %2682 = vmatprep.subr.mxu0 %v1389_v24 }
 0x3d5   : > { %2683 = vmatpush3.msra.mxu0 %v1389_v24  ;;  %v1921_v24 = vld [vmem:[#allocation7 + $0x450] sm:$0xff] }
 0x3d6   : > { %2684 = vmatprep.subr.mxu0 %v1388_v25 }
 0x3d7   : > { %2685 = vmatpush3.msra.mxu0 %v1388_v25  ;;  %v1920_v25 = vld [vmem:[#allocation7 + $0x448] sm:$0xff] }
 0x3d8   : > { %2686 = vmatprep.subr.mxu0 %v1387_v26 }
 0x3d9   : > { %2687 = vmatpush3.msra.mxu0 %v1387_v26  ;;  %v1919_v26 = vld [vmem:[#allocation7 + $0x440] sm:$0xff] }
 0x3da   : > { %2688 = vmatprep.subr.mxu0 %v1386_v27 }
 0x3db   : > { %2689 = vmatpush3.msra.mxu0 %v1386_v27  ;;  %v1918_v27 = vld [vmem:[#allocation7 + $0x438] sm:$0xff] }
 0x3dc   : > { %2690 = vmatprep.subr.mxu0 %v1385_v28 }
 0x3dd   : > { %2691 = vmatpush3.msra.mxu0 %v1385_v28  ;;  %v1916_v28 = vld [vmem:[#allocation7 + $0x428] sm:$0xff] }
 0x3de   : > { %2692 = vmatprep.subr.mxu0 %v1384_v29 }
 0x3df   : > { %2693 = vmatpush3.msra.mxu0 %v1384_v29  ;;  %v1915_v29 = vld [vmem:[#allocation7 + $0x420] sm:$0xff] }
 0x3e0   : > { %2694 = vmatprep.subr.mxu0 %v1383_v30 }
 0x3e1   : > { %2695 = vmatpush3.msra.mxu0 %v1383_v30  ;;  %v1914_v30 = vld [vmem:[#allocation7 + $0x418] sm:$0xff] }
 0x3e2   : > { %2696 = vmatprep.subr.mxu0 %v1382_v31 }
 0x3e3   : > { %2697 = vmatpush3.msra.mxu0 %v1382_v31  ;;  %v1913_v31 = vld [vmem:[#allocation7 + $0x410] sm:$0xff] }
 0x3e4   : > { %2698 = vmatprep.subr.mxu0 %v1381_v32 }
 0x3e5   : > { %2699 = vmatpush3.msra.mxu0 %v1381_v32  ;;  %v1912_v32 = vld [vmem:[#allocation7 + $0x408] sm:$0xff] }
 0x3e6   : > { %2700 = vmatprep.subr.mxu0 %v1380_v35 }
 0x3e7   : > { %2701 = vmatpush3.msra.mxu0 %v1380_v35  ;;  %v1911_v35 = vld [vmem:[#allocation7 + $0x400] sm:$0xff] }
 0x3e8   : > { %2702 = vmatprep.subr.mxu0 %v1379_v36 }
 0x3e9   : > { %2703 = vmatpush3.msra.mxu0 %v1379_v36  ;;  %v2003_v36 = vld [vmem:[#allocation8 + $0x80] sm:$0xff] }
 0x3ea   : > { %2704 = vmatprep.subr.mxu0 %v1378_v37 }
 0x3eb   : > { %2705 = vmatpush3.msra.mxu0 %v1378_v37 }
 0x3ec   : > { %2706 = vmatprep.subr.mxu0 %v1377_v38 }
 0x3ed   : > { %2707 = vmatpush3.msra.mxu0 %v1377_v38 }
 0x3ee   : > { %2709 = vmatmul.mubr.f32.vlgmr.msra.gmra.mxu0 %v3335_v34 }
 0x3ef   : > { %2715 = vmatprep.mubr.msk.f32.mxu0 %vm582_vm1, %v1469_v39 }
 0x48a   : > { %v2633_v40 = vpop.f32.mrf.mxu0 }
 0x48b   : > { %v1197_v41 = vadd.f32 %v2633_v40, %v3365_v11 }
 0x48c   : > { %v1187_v42 = vpop.f32.mrf.mxu0 }
 0x48d   : > { %v1196_v43 = vadd.f32 %v1187_v42, %v3367_v13 }
 0x48e   : > { %v2675_v44 = vpop.f32.mrf.mxu0 }
 0x48f   : > { %v3377_v45 = vadd.f32 %v2675_v44, %v1197_v41 }
 0x490   : > { %v1365_v46 = vpop.f32.mrf.mxu0 }
 0x491   : > { %v3379_v47 = vadd.f32 %v1365_v46, %v1196_v43  ;;  %v2004_v43 = vld [vmem:[#allocation8 + $0x88] sm:$0xff] }
 0x4ae   : > { %v2710_v48 = vpop.f32.mrf.mxu0 }
 0x4af   : > { %2711 = vmatprep.subr.mxu0 %v2710_v48 }
 0x4b0   : > { %v1459_v50 = vpop.f32.mrf.mxu0  ;;  %2712 = vmatpush3.msra.mxu0 %v2710_v48 }
 0x4b1   : > { %2713 = vmatprep.subr.mxu0 %v1459_v50 }
 0x4b2   : > { %2714 = vmatpush3.msra.mxu0 %v1459_v50 }
 0x4b3   : > { %2716 = vmatmul.mubr.msk.f32.vlgmr.msra.gmra.mxu0 %vm582_vm1, %v1470_v51  ;;  %2753 = vmatprep.subr.mxu0 %v2752_v49 }
 0x4b4   : > { %2754 = vmatpush3.msra.mxu0 %v2752_v49  ;;  %2757 = vmatprep.mubr.msk.f32.mxu0 %vm582_vm1, %v1647_v52 }
 0x4b5   : > { %2755 = vmatprep.subr.mxu0 %v1637_v53 }
 0x4b6   : > { %2756 = vmatpush3.msra.mxu0 %v1637_v53 }
 0x4b7   : > { %2758 = vmatmul.mubr.msk.f32.vlgmr.msra.gmra.mxu0 %vm582_vm1, %v1648_v54  ;;  %2760 = vmatprep.subr.mxu0 %v1748_v55 }
 0x4b8   : > { %2761 = vmatpush3.msra.mxu0 %v1748_v55  ;;  %2792 = vmatprep.mubr.f32.mxu0 %v3333_v33 }
 0x4b9   : > { %2762 = vmatprep.subr.mxu0 %v1747_v56 }
 0x4ba   : > { %2763 = vmatpush3.msra.mxu0 %v1747_v56 }
 0x4bb   : > { %2764 = vmatprep.subr.mxu0 %v1746_v57 }
 0x4bc   : > { %2765 = vmatpush3.msra.mxu0 %v1746_v57 }
 0x4bd   : > { %2766 = vmatprep.subr.mxu0 %v1745_v58 }
 0x4be   : > { %2767 = vmatpush3.msra.mxu0 %v1745_v58 }
 0x4bf   : > { %2768 = vmatprep.subr.mxu0 %v1744_v59 }
 0x4c0   : > { %2769 = vmatpush3.msra.mxu0 %v1744_v59 }
 0x4c1   : > { %2770 = vmatprep.subr.mxu0 %v1743_v60 }
 0x4c2   : > { %2771 = vmatpush3.msra.mxu0 %v1743_v60 }
 0x4c3   : > { %2772 = vmatprep.subr.mxu0 %v1742_v61 }
 0x4c4   : > { %2773 = vmatpush3.msra.mxu0 %v1742_v61 }
 0x4c5   : > { %2774 = vmatprep.subr.mxu0 %v1741_v62 }
 0x4c6   : > { %2775 = vmatpush3.msra.mxu0 %v1741_v62 }
 0x4c7   : > { %2776 = vmatprep.subr.mxu0 %v1740_v63 }
 0x4c8   : > { %2777 = vmatpush3.msra.mxu0 %v1740_v63 }
 0x4c9   : > { %2778 = vmatprep.subr.mxu0 %v1739_v0 }
 0x4ca   : > { %2779 = vmatpush3.msra.mxu0 %v1739_v0 }
 0x4cb   : > { %2780 = vmatprep.subr.mxu0 %v1738_v1 }
 0x4cc   : > { %2781 = vmatpush3.msra.mxu0 %v1738_v1 }
 0x4cd   : > { %2782 = vmatprep.subr.mxu0 %v1737_v2 }
 0x4ce   : > { %2783 = vmatpush3.msra.mxu0 %v1737_v2 }
 0x4cf   : > { %2784 = vmatprep.subr.mxu0 %v1736_v3 }
 0x4d0   : > { %2785 = vmatpush3.msra.mxu0 %v1736_v3 }
 0x4d1   : > { %2786 = vmatprep.subr.mxu0 %v1735_v4 }
 0x4d2   : > { %2787 = vmatpush3.msra.mxu0 %v1735_v4 }
 0x4d3   : > { %2788 = vmatprep.subr.mxu0 %v1734_v5 }
 0x4d4   : > { %2789 = vmatpush3.msra.mxu0 %v1734_v5 }
 0x4d5   : > { %2790 = vmatprep.subr.mxu0 %v1733_v6 }
 0x4d6   : > { %2791 = vmatpush3.msra.mxu0 %v1733_v6 }
 0x4d7   : > { %2793 = vmatmul.mubr.f32.vlgmr.msra.gmra.mxu0 %v3335_v34 }
 0x4d8   : > { %2841 = vmatprep.mubr.msk.f32.mxu0 %vm582_vm1, %v2003_v36 }
 0x573   : > { %v2717_v8 = vpop.f32.mrf.mxu0 }
 0x574   : > { %v1553_v9 = vadd.f32 %v2717_v8, %v3377_v45 }
 0x575   : > { %v1543_v10 = vpop.f32.mrf.mxu0 }
 0x576   : > { %v1552_v11 = vadd.f32 %v1543_v10, %v3379_v47 }
 0x577   : > { %v2759_v12 = vpop.f32.mrf.mxu0 }
 0x578   : > { %v3389_v13 = vadd.f32 %v2759_v12, %v1553_v9 }
 0x579   : > { %v1721_v14 = vpop.f32.mrf.mxu0 }
 0x57a   : > { %v3391_v15 = vadd.f32 %v1721_v14, %v1552_v11 }
 0x597   : > { %v2794_v16 = vpop.f32.mrf.mxu0 }
 0x598   : > { %2795 = vmatprep.subr.mxu1 %v2794_v16 }
 0x599   : > { %v1815_v17 = vpop.f32.mrf.mxu0  ;;  %2796 = vmatpush3.msra.mxu1 %v2794_v16 }
 0x59a   : > { %2797 = vmatprep.subr.mxu1 %v1815_v17 }
 0x59b   : > { %2798 = vmatpush3.msra.mxu1 %v1815_v17 }
 0x59c   : > { %2800 = vmatmul.mubr.msk.f32.vlgmr.msra.gmra.mxu1 %vm582_vm1, %v1826_v18  ;;  %2802 = vmatprep.subr.mxu1 %v1926_v19 }
 0x59d   : > { %2803 = vmatpush3.msra.mxu1 %v1926_v19  ;;  %2834 = vmatprep.mubr.f32.mxu1 %v3333_v33  ;;  %v1917_v33 = vld [vmem:[#allocation7 + $0x430] sm:$0xff] }
 0x59e   : > { %2804 = vmatprep.subr.mxu1 %v1925_v20 }
 0x59f   : > { %2805 = vmatpush3.msra.mxu1 %v1925_v20 }
 0x5a0   : > { %2806 = vmatprep.subr.mxu1 %v1924_v21 }
 0x5a1   : > { %2807 = vmatpush3.msra.mxu1 %v1924_v21 }
 0x5a2   : > { %2808 = vmatprep.subr.mxu1 %v1923_v22 }
 0x5a3   : > { %2809 = vmatpush3.msra.mxu1 %v1923_v22 }
 0x5a4   : > { %2810 = vmatprep.subr.mxu1 %v1922_v23 }
 0x5a5   : > { %2811 = vmatpush3.msra.mxu1 %v1922_v23 }
 0x5a6   : > { %2812 = vmatprep.subr.mxu1 %v1921_v24 }
 0x5a7   : > { %2813 = vmatpush3.msra.mxu1 %v1921_v24 }
 0x5a8   : > { %2814 = vmatprep.subr.mxu1 %v1920_v25 }
 0x5a9   : > { %2815 = vmatpush3.msra.mxu1 %v1920_v25 }
 0x5aa   : > { %2816 = vmatprep.subr.mxu1 %v1919_v26 }
 0x5ab   : > { %2817 = vmatpush3.msra.mxu1 %v1919_v26 }
 0x5ac   : > { %2818 = vmatprep.subr.mxu1 %v1918_v27 }
 0x5ad   : > { %2819 = vmatpush3.msra.mxu1 %v1918_v27 }
 0x5ae   : > { %2820 = vmatprep.subr.mxu1 %v1917_v33 }
 0x5af   : > { %2821 = vmatpush3.msra.mxu1 %v1917_v33 }
 0x5b0   : > { %2822 = vmatprep.subr.mxu1 %v1916_v28 }
 0x5b1   : > { %2823 = vmatpush3.msra.mxu1 %v1916_v28 }
 0x5b2   : > { %2824 = vmatprep.subr.mxu1 %v1915_v29 }
 0x5b3   : > { %2825 = vmatpush3.msra.mxu1 %v1915_v29 }
 0x5b4   : > { %2826 = vmatprep.subr.mxu1 %v1914_v30 }
 0x5b5   : > { %2827 = vmatpush3.msra.mxu1 %v1914_v30 }
 0x5b6   : > { %2828 = vmatprep.subr.mxu1 %v1913_v31 }
 0x5b7   : > { %2829 = vmatpush3.msra.mxu1 %v1913_v31 }
 0x5b8   : > { %2830 = vmatprep.subr.mxu1 %v1912_v32 }
 0x5b9   : > { %2831 = vmatpush3.msra.mxu1 %v1912_v32 }
 0x5ba   : > { %2832 = vmatprep.subr.mxu1 %v1911_v35 }
 0x5bb   : > { %2833 = vmatpush3.msra.mxu1 %v1911_v35 }
 0x5bc   : > { %2835 = vmatmul.mubr.f32.vlgmr.msra.gmra.mxu1 %v3335_v34 }
 0x65c   : > { %v2801_v37 = vpop.f32.mrf.mxu1 }
 0x65d   : > { %v1909_v38 = vadd.f32 %v2801_v37, %v3389_v13 }
 0x65e   : > { %v1899_v39 = vpop.f32.mrf.mxu1 }
 0x65f   : > { %v1908_v40 = vadd.f32 %v1899_v39, %v3391_v15 }
 0x67c   : > { %v2836_v41 = vpop.f32.mrf.mxu1 }
 0x67d   : > { %2837 = vmatprep.subr.mxu0 %v2836_v41 }
 0x67e   : > { %v1993_v42 = vpop.f32.mrf.mxu1  ;;  %2838 = vmatpush3.msra.mxu0 %v2836_v41 }
 0x67f   : > { %2839 = vmatprep.subr.mxu0 %v1993_v42 }
 0x680   : > { %2840 = vmatpush3.msra.mxu0 %v1993_v42 }
 0x681   : > { %2842 = vmatmul.mubr.msk.f32.vlgmr.msra.gmra.mxu0 %vm582_vm1, %v2004_v43 }
 0x741   : > { %v2843_v34 = vpop.f32.mrf.mxu0 }
 0x742   : > { %v2087_v44 = vadd.f32 %v2843_v34, %v1909_v38 }
 0x743   : > { %v2077_v45 = vpop.f32.mrf.mxu0 }
 0x744   : > { %v2089_v46 = vmax.f32 %v2087_v44, 0.0  ;;  %v2086_v47 = vadd.f32 %v2077_v45, %v1908_v40 }
 0x746   : > { %2091 = vst [vmem:[%s367_s10 + $0x8] sm:$0xff] %v2089_v46  ;;  %v2088_v48 = vmax.f32 %v2086_v47, 0.0 }
 0x748   : > { %2090 = vst [vmem:[%s367_s10] sm:$0xff] %v2088_v48 }
 0x749   : > { %3044 = shalt.err (!%p3041_p10)
}
 0x74a   : > { %s3045_s16 = scalar_lea.hbm %s3408_s11, 256  ;;  %s3049_s26 = scalar_lea.hbm %s3459_s8, 512 }
 0x74b   : > { %p3046_p6 = scmp.ne.s32.totalorder %s3408_s11, %s3045_s16  ;;  %p3050_p3 = scmp.lt.s32.totalorder %s3408_s11, %s3459_s8 }
 0x74c   : > { %p3051_p11 = scmp.lt.s32.totalorder %s3049_s26, %s3045_s16 }
 0x74d   : > { %p3047_p4 = pnand %p3046_p6, %p3484_p1 }
 0x74e   : > { %p3052_p5 = por %p3051_p11, %p3050_p3 }
 0x74f   : > { %p3048_p8 = pneg %p3047_p4 }
 0x751   : > { %p3053_p7 = pnand %p3052_p5, %p3048_p8 }
 0x753   : > { %3056 = shalt.err (!%p3053_p7)
}
 0x754   : > { %s3112_s20 = smov 128   ;;  %s3113_s21 = smov 8  }
 0x755   : > { %2858 = dma.vmem_to_hbm [thread:$0]  (%p3484_p1), %s3403_s23, 256, %s3408_s11, %s2093_s5, %s3112_s20, %s3112_s20, %s3113_s21  }
 0x756 PF: > { %s2121_s13 = sand.u32 1, %s3091_s27   ;;  %p3485_p12 = scmp.ne.s32.totalorder %s3469_s12, 0 }
 0x757   : > { %p3486_p9 = scmp.ge.s32.totalorder %s3103_s30, 2  ;;  %s2122_s9 = scalar_lea.sflag [#allocation4], %s2121_s13 }
 0x759   : > { %p2875_p13 = pnand %p3486_p9, %p3485_p12 }
 0x75b   : > { %p2876_p0 = pneg %p2875_p13 }
 0x75d   : > { %3086 = dma.done.wait (%p2876_p0), %s2122_s9, 256  }
 0x75e   : > { %3088 = vsyncadd (%p2876_p0), %s2122_s9, 4294967040  ;;  %p23_p2 = scmp.ge.s32.totalorder %s3248_s18, 4   ;;  %s3487_s27 = smov %s3095_s28 }
 0x75f   : > { %s3488_s28 = smov %s3099_s29  ;;  %s3489_s29 = smov %s3258_s24 }
 0x760   : > { %s3490_s30 = smov %s3248_s18  ;;  %25 = sbr.rel (!%p23_p2) target bundleno = 10 (0xa), region = 125 }
 0x765   :  { %2127 = vsyncpa [#allocation3], 1 }
 0x766   :  { %2129 = vsyncpa [#allocation3 + $0x1], 1 }
 0x767   :  { %2130 = vsyncpa [#allocation6], 1 }
 0x768   :  { %2131 = vsyncpa [#allocation9], 1 }
 0x769   :  { %2132 = vsyncpa [#allocation4], 1 }
 0x76a   :  { %2134 = vsyncpa [#allocation4 + $0x1], 1 }

</bundles_post_ra>
